<compile_context>
chip_gen: v5e
topology: v5e:2x2
jax: 0.10.0
libtpu: 0.0.40
codegen_flags: <defaults>
</compile_context>

<pallas_src>
import jax
import jax.numpy as jnp
import numpy as np
from jax.experimental import pallas as pl
from jax.experimental.pallas import tpu as pltpu


# ----------------------------------------------------------------------------- kernel


def _unet_up_kernel(xw_ref, wk_ref, o_ref, acc_ref):
    """One (batch, channel-tile) step of the fused up-block.

    xw_ref : (1, (H+2)*W, 3*Cin)     bf16.  Rows are the H-padded input with
             (H, W) flattened; channel blocks are the dw = -1/0/+1 W-shifts, so
             each phase's two W taps are one contiguous 2*Cin lane slab and the
             dh shift is a contiguous row-range slice — every MXU operand is a
             native 2-D slice (no reshapes).
    wk_ref : (2, 2, 2, 2*Cin, TC)    bf16, indexed [p, q, dh-tap, K, cout]; the
             K axis stacks the two matching ConvTranspose taps.
    o_ref  : (1, 1, 2, H*W, 2*TC)    bf16, dims (n, ctile, p, a*W+b, (q, c)) ==
             final (normalized + ReLU) value of output pixel (2a+p, 2b+q),
             channel c of this tile.
    acc_ref: (2, H*W, 2*TC)          f32 scratch holding the raw phases.
    """
    HWp = xw_ref.shape[1]          # (H + 2) * W
    cin3 = xw_ref.shape[2]
    Cin = cin3 // 3
    TC = wk_ref.shape[-1]
    HW = acc_ref.shape[1]          # H * W
    W = (HWp - HW) // 2            # padding adds exactly 2 rows of W pixels

    # dh offset per (p, t): t=0 -> dh=0, t=1 -> dh=-1 (p=0) / +1 (p=1).
    DH = ((0, -1), (0, 1))

    sum_c = jnp.zeros((1, TC), jnp.float32)   # per-channel running sum
    ssq_c = jnp.zeros((1, TC), jnp.float32)   # per-channel running sum of squares

    for p in (0, 1):
        for q in (0, 1):
            y = None
            for t in (0, 1):
                dh = DH[p][t]
                r0 = (1 + dh) * W                       # static row offset
                # (HW, 2*Cin) bf16 slab; lane start q*Cin is 128-aligned.
                xs = xw_ref[0, r0:r0 + HW, q * Cin:(q + 2) * Cin]
                part = jnp.dot(xs, wk_ref[p, q, t],
                               preferred_element_type=jnp.float32)
                y = part if y is None else y + part     # (HW, TC) f32
            sum_c = sum_c + jnp.sum(y, axis=0, keepdims=True)
            ssq_c = ssq_c + jnp.sum(y * y, axis=0, keepdims=True)
            # Raw phase into f32 scratch (single-buffered; reused every step).
            acc_ref[p, :, q * TC:(q + 1) * TC] = y

    # InstanceNorm2d (affine=False, eps=1e-5): per-channel stats over the full
    # 2H x 2W output == union of the 4 phases (one-pass variance, clamped >= 0).
    n_elem = jnp.float32(4 * HW)
    mean = sum_c / n_elem                                       # (1, TC)
    var = jnp.maximum(ssq_c / n_elem - mean * mean, 0.0)
    inv_std = jax.lax.rsqrt(var + 1e-5)

    # Second short pass: normalize + ReLU, emit bf16 (halves writeback DMA).
    for p in (0, 1):
        for q in (0, 1):
            blk = acc_ref[p, :, q * TC:(q + 1) * TC]            # (HW, TC) f32
            o_ref[0, 0, p, :, q * TC:(q + 1) * TC] = jnp.maximum(
                (blk - mean) * inv_std, 0.0).astype(o_ref.dtype)


# ----------------------------------------------------------------------------- wrapper helpers


def _round_up(v, m):
    return (v + m - 1) // m * m


def _vmem_cap_bytes():
    """Physical VMEM per TensorCore minus headroom (generation aware)."""
    cap = 64 * 1024 * 1024                       # safe fallback (v7x-sized)
    try:
        info = pltpu.get_tpu_info()
        cap = int(getattr(info, "vmem_capacity_bytes", cap))
    except Exception:
        pass
    return max(cap - 8 * 1024 * 1024, 16 * 1024 * 1024)


def _is_v5e():
    try:
        kind = jax.devices()[0].device_kind.lower()
    except Exception:
        return False
    return ("v5e" in kind) or ("v5 lite" in kind) or ("v5lite" in kind)


def _vmem_estimate(H, W, cin_p, tc):
    bytes_in = (H + 2) * W * 3 * cin_p * 2       # bf16 staged input block
    bytes_w = 16 * cin_p * tc * 2                # bf16 weight block
    bytes_out = 4 * H * W * tc * 2               # bf16 output block
    scratch = 4 * H * W * tc * 4                 # f32 raw-phase scratch
    live = 2 * H * W * tc * 4                    # y + elementwise temporaries
    return 2 * (bytes_in + bytes_w + bytes_out) + scratch + live


def _pick_channel_tile(cout_p, H, W, cin_p, N, vmem_cap):
    """Largest MXU-friendly channel tile that divides Cout_p, fits VMEM, and
    keeps both TensorCores busy.  v5e prefers 128 (native MXU N tile)."""
    cands = [tc for tc in (256, 128) if cout_p % tc == 0]
    if _is_v5e():
        cands = sorted(cands)                    # 128 first on v5e
    fitting = [tc for tc in cands if _vmem_estimate(H, W, cin_p, tc) <= vmem_cap]
    pool = fitting if fitting else [min(cands)]
    # Prefer a tile that gives >= 2 grid steps so 2-TC sharding has work.
    for tc in pool:
        if N * (cout_p // tc) >= 2:
            return tc
    return pool[0]
    # TODO(synk): if even TC=128 exceeds the VMEM cap (huge spatial layers),
    # add H-tiling with a cross-step stats reduction instead of raising limits.


# ----------------------------------------------------------------------------- forward


def unet_up(x_nchw, skip_nchw, weight, dropout=0.0):
    """UNetUp forward.  x_nchw: (N, Cin, H, W), skip_nchw: (N, Cskip, 2H, 2W),
    weight: (Cin, Cout, 4, 4) (PyTorch ConvTranspose2d layout).  Returns NCHW."""
    # TODO(synk): dropout > 0 would need in-kernel pltpu.prng_*; module default is 0.0.
    N, Cin, H, W = x_nchw.shape
    Cout = weight.shape[1]

    LANE = 128
    Cin_p = _round_up(Cin, LANE)
    Cout_p = _round_up(Cout, LANE)

    vmem_cap = _vmem_cap_bytes()
    TC = _pick_channel_tile(Cout_p, H, W, Cin_p, N, vmem_cap)
    n_ct = Cout_p // TC

    # ---- stage the input: NHWC bf16, pad channels to 128-multiple, pad H/W by
    #      1, fold dw = -1/0/+1 W-shifts into the channel axis, flatten (H+2, W).
    x = jnp.transpose(x_nchw, (0, 2, 3, 1)).astype(jnp.bfloat16)       # NHWC
    if Cin_p != Cin:
        x = jnp.pad(x, ((0, 0), (0, 0), (0, 0), (0, Cin_p - Cin)))
    xp = jnp.pad(x, ((0, 0), (1, 1), (1, 1), (0, 0)))                  # (N,H+2,W+2,Cin_p)
    xw = jnp.concatenate([xp[:, :, 0:W], xp[:, :, 1:W + 1], xp[:, :, 2:W + 2]],
                         axis=-1)                                      # (N,H+2,W,3*Cin_p)
    xw = xw.reshape(N, (H + 2) * W, 3 * Cin_p)                         # (N,(H+2)*W,3*Cin_p)

    # ---- stage the weights: (kh,kw,Cin,Cout) padded, then per (p, q, dh-tap)
    #      stack the two matching taps along K -> (2, 2, 2, 2*Cin_p, Cout_p), bf16.
    w = jnp.transpose(weight, (2, 3, 0, 1)).astype(jnp.bfloat16)       # (4,4,Cin,Cout)
    if Cin_p != Cin or Cout_p != Cout:
        w = jnp.pad(w, ((0, 0), (0, 0), (0, Cin_p - Cin), (0, Cout_p - Cout)))
    KH = {(0, 0): 1, (0, 1): 3, (1, 0): 2, (1, 1): 0}   # (p, t)          -> kh
    KW = {(0, 0): 3, (0, 1): 1, (1, 0): 2, (1, 1): 0}   # (q, slab-block)  -> kw
    wk = jnp.stack([
        jnp.stack([
            jnp.stack([
                jnp.concatenate([w[KH[(p, t)], KW[(q, 0)]],
                                 w[KH[(p, t)], KW[(q, 1)]]], axis=0)
                for t in (0, 1)], axis=0)
            for q in (0, 1)], axis=0)
        for p in (0, 1)], axis=0)                                      # (2,2,2,2*Cin_p,Cout_p)

    # ---- VMEM budget (generation aware; never exceeds the physical cap).
    vmem_est = _vmem_estimate(H, W, Cin_p, TC)
    vmem_limit = int(min(max(vmem_est * 5 // 4, 32 * 1024 * 1024), vmem_cap))

    # ---- per-layer grid-axis order: put the heavier block on the slow axis.
    # Weight block bytes per step: 16*Cin_p*TC*2; input block: 3*(H+2)*W*Cin_p*2.
    weight_heavy = 16 * TC > 3 * (H + 2) * W
    if weight_heavy:
        grid = (n_ct, N)
        x_map = lambda j, n: (n, 0, 0)
        w_map = lambda j, n: (0, 0, 0, 0, j)
        o_map = lambda j, n: (n, j, 0, 0, 0)
    else:
        grid = (N, n_ct)
        x_map = lambda n, j: (n, 0, 0)
        w_map = lambda n, j: (0, 0, 0, 0, j)
        o_map = lambda n, j: (n, j, 0, 0, 0)

    # ---- advisory cost estimate so XLA schedules the staging ops around us.
    flops = 2 * 16 * N * H * W * Cin_p * Cout_p
    transcendentals = N * Cout_p
    bytes_accessed = (N * (H + 2) * W * 3 * Cin_p * 2
                      + 16 * Cin_p * Cout_p * 2
                      + N * 4 * H * W * Cout_p * 2)

    out_ph = pl.pallas_call(
        _unet_up_kernel,
        out_shape=jax.ShapeDtypeStruct((N, n_ct, 2, H * W, 2 * TC), jnp.bfloat16),
        grid_spec=pltpu.PrefetchScalarGridSpec(
            num_scalar_prefetch=0,
            grid=grid,
            in_specs=[
                pl.BlockSpec((1, (H + 2) * W, 3 * Cin_p), x_map),
                pl.BlockSpec((2, 2, 2, 2 * Cin_p, TC), w_map),
            ],
            out_specs=pl.BlockSpec((1, 1, 2, H * W, 2 * TC), o_map),
            scratch_shapes=[pltpu.VMEM((2, H * W, 2 * TC), jnp.float32)],
        ),
        compiler_params=pltpu.CompilerParams(
            dimension_semantics=("parallel", "parallel"),
            vmem_limit_bytes=vmem_limit),
        cost_estimate=pl.CostEstimate(
            flops=flops, transcendentals=transcendentals,
            bytes_accessed=bytes_accessed),
    )(xw, wk)

    # ---- single fused permutation straight to NCHW:
    # (N, n_ct, p, H, W, q, TC) -> (N, n_ct, TC, H, p, W, q) -> (N, Cout_p, 2H, 2W)
    out_ph = out_ph.reshape(N, n_ct, 2, H, W, 2, TC)
    y = jnp.transpose(out_ph, (0, 1, 6, 3, 2, 4, 5)).reshape(N, Cout_p, 2 * H, 2 * W)
    y = y[:, :Cout].astype(skip_nchw.dtype)

    # ---- concat the skip connection (skip never transposed / copied otherwise).
    return jnp.concatenate([y, skip_nchw], axis=1)


# ----------------------------------------------------------------------------- reference


def ref_unet_up(x, skip, weight):
    """Pure-JAX reference (matches PyTorch UNetUp with dropout=0)."""
    w_flip = jnp.flip(weight, axis=(2, 3))                    # (Cin, Cout, 4, 4)
    rhs = jnp.transpose(w_flip, (1, 0, 2, 3))                 # (Cout, Cin, 4, 4)
    y = jax.lax.conv_general_dilated(
        x, rhs, window_strides=(1, 1), padding=[(2, 2), (2, 2)],
        lhs_dilation=(2, 2), dimension_numbers=("NCHW", "OIHW", "NCHW"))
    mean = y.mean(axis=(2, 3), keepdims=True)
    var = jnp.square(y - mean).mean(axis=(2, 3), keepdims=True)
    y = jnp.maximum((y - mean) * jax.lax.rsqrt(var + 1e-5), 0.0)
    return jnp.concatenate([y, skip], axis=1)


# ----------------------------------------------------------------------------- self-test


if __name__ == "__main__":
    key = jax.random.PRNGKey(0)

    cases = [
        # (N, Cin, Cout, H, W)
        (2, 8, 8, 8, 8),        # small baseline: channel-padding path, weights-outer grid
        (1, 128, 256, 8, 8),    # lane-aligned channels, n_ct > 1 (TC=128, two grid steps)
        (1, 8, 8, 32, 32),      # larger spatial: batch-outer grid order path
    ]
    for (N, Cin, Cout, H, W) in cases:
        k1, k2, k3, key = jax.random.split(key, 4)
        x = jax.random.normal(k1, (N, Cin, H, W), jnp.float32)
        skip = jax.random.normal(k2, (N, Cout, 2 * H, 2 * W), jnp.float32)
        weight = 0.1 * jax.random.normal(k3, (Cin, Cout, 4, 4), jnp.float32)

        out = jax.block_until_ready(unet_up(x, skip, weight))
        ref = ref_unet_up(x, skip, weight)

        # bf16 MXU operands + bf16 output store (f32 accumulation / stats).
        np.testing.assert_allclose(np.asarray(out), np.asarray(ref),
                                   rtol=5e-2, atol=5e-2)
        assert out.shape == (N, 2 * Cout, 2 * H, 2 * W)

    print("KERNEL_OK")
</pallas_src>

<mosaic_0001>
module attributes {stable_mosaic.version = 11 : i64} {
  func.func @_unet_up_kernel(%arg0: i32, %arg1: i32, %arg2: memref<1x80x384xbf16, #tpu.memory_space<vmem>>, %arg3: memref<2x2x2x256x128xbf16, #tpu.memory_space<vmem>>, %arg4: memref<1x1x2x64x256xbf16, #tpu.memory_space<vmem>>, %arg5: memref<2x64x256xf32, #tpu.memory_space<vmem>>) attributes {dimension_semantics = [#tpu.dimension_semantics<parallel>, #tpu.dimension_semantics<parallel>], iteration_bounds = array<i64: 1, 2>, scalar_prefetch = 0 : i64, scratch_operands = 1 : i64, tpu.core_type = #tpu.core_type<tc>, window_params = [{transform_indices = @transform_0, window_bounds = array<i64: 1, 80, 384>}, {transform_indices = @transform_1, window_bounds = array<i64: 2, 2, 2, 256, 128>}, {transform_indices = @transform_2, window_bounds = array<i64: 1, 1, 2, 64, 256>}]} {
    %cst = arith.constant 0.000000e+00 : f32
    %0 = vector.broadcast %cst : f32 to vector<1x128xf32>
    %cst_0 = arith.constant 0.000000e+00 : f32
    %1 = vector.broadcast %cst_0 : f32 to vector<1x128xf32>
    %c0 = arith.constant 0 : index
    %c8 = arith.constant 8 : index
    %c0_1 = arith.constant 0 : index
    %2 = vector.load %arg2[%c0, %c8, %c0_1] : memref<1x80x384xbf16, #tpu.memory_space<vmem>>, vector<1x64x256xbf16>
    %3 = vector.shape_cast %2 : vector<1x64x256xbf16> to vector<64x256xbf16>
    %c0_2 = arith.constant 0 : index
    %c0_3 = arith.constant 0 : index
    %c0_4 = arith.constant 0 : index
    %c0_5 = arith.constant 0 : index
    %c0_6 = arith.constant 0 : index
    %4 = vector.load %arg3[%c0_2, %c0_3, %c0_4, %c0_5, %c0_6] : memref<2x2x2x256x128xbf16, #tpu.memory_space<vmem>>, vector<1x1x1x256x128xbf16>
    %5 = vector.shape_cast %4 : vector<1x1x1x256x128xbf16> to vector<256x128xbf16>
    %cst_7 = arith.constant dense<0.000000e+00> : vector<64x128xf32>
    %6 = tpu.matmul %3, %5, %cst_7 {dimension_numbers = #tpu.dot_dimension_numbers<[1], [0], [0], [1], [0, 0, 1, 1], [], []>} : vector<64x256xbf16>, vector<256x128xbf16>, vector<64x128xf32> -> vector<64x128xf32>
    %c0_8 = arith.constant 0 : index
    %c0_9 = arith.constant 0 : index
    %c0_10 = arith.constant 0 : index
    %7 = vector.load %arg2[%c0_8, %c0_9, %c0_10] : memref<1x80x384xbf16, #tpu.memory_space<vmem>>, vector<1x64x256xbf16>
    %8 = vector.shape_cast %7 : vector<1x64x256xbf16> to vector<64x256xbf16>
    %c0_11 = arith.constant 0 : index
    %c0_12 = arith.constant 0 : index
    %c1 = arith.constant 1 : index
    %c0_13 = arith.constant 0 : index
    %c0_14 = arith.constant 0 : index
    %9 = vector.load %arg3[%c0_11, %c0_12, %c1, %c0_13, %c0_14] : memref<2x2x2x256x128xbf16, #tpu.memory_space<vmem>>, vector<1x1x1x256x128xbf16>
    %10 = vector.shape_cast %9 : vector<1x1x1x256x128xbf16> to vector<256x128xbf16>
    %cst_15 = arith.constant dense<0.000000e+00> : vector<64x128xf32>
    %11 = tpu.matmul %8, %10, %cst_15 {dimension_numbers = #tpu.dot_dimension_numbers<[1], [0], [0], [1], [0, 0, 1, 1], [], []>} : vector<64x256xbf16>, vector<256x128xbf16>, vector<64x128xf32> -> vector<64x128xf32>
    %12 = arith.addf %6, %11 : vector<64x128xf32>
    %cst_16 = arith.constant dense<0.000000e+00> : vector<128xf32>
    %13 = vector.multi_reduction <add>, %12, %cst_16 [0] : vector<64x128xf32> to vector<128xf32>
    %14 = vector.shape_cast %13 : vector<128xf32> to vector<1x128xf32>
    %15 = arith.addf %0, %14 : vector<1x128xf32>
    %16 = arith.mulf %12, %12 : vector<64x128xf32>
    %cst_17 = arith.constant dense<0.000000e+00> : vector<128xf32>
    %17 = vector.multi_reduction <add>, %16, %cst_17 [0] : vector<64x128xf32> to vector<128xf32>
    %18 = vector.shape_cast %17 : vector<128xf32> to vector<1x128xf32>
    %19 = arith.addf %1, %18 : vector<1x128xf32>
    %c0_18 = arith.constant 0 : index
    %c0_19 = arith.constant 0 : index
    %c0_20 = arith.constant 0 : index
    %20 = vector.load %arg5[%c0_18, %c0_19, %c0_20] : memref<2x64x256xf32, #tpu.memory_space<vmem>>, vector<1x64x128xf32>
    %21 = vector.shape_cast %20 : vector<1x64x128xf32> to vector<64x128xf32>
    %22 = vector.shape_cast %12 : vector<64x128xf32> to vector<1x64x128xf32>
    tpu.vector_store %arg5[%c0_18, %c0_19, %c0_20], %22 {strides = array<i32>} : memref<2x64x256xf32, #tpu.memory_space<vmem>>, vector<1x64x128xf32>,
    %c0_21 = arith.constant 0 : index
    %c8_22 = arith.constant 8 : index
    %c128 = arith.constant 128 : index
    %23 = vector.load %arg2[%c0_21, %c8_22, %c128] : memref<1x80x384xbf16, #tpu.memory_space<vmem>>, vector<1x64x256xbf16>
    %24 = vector.shape_cast %23 : vector<1x64x256xbf16> to vector<64x256xbf16>
    %c0_23 = arith.constant 0 : index
    %c1_24 = arith.constant 1 : index
    %c0_25 = arith.constant 0 : index
    %c0_26 = arith.constant 0 : index
    %c0_27 = arith.constant 0 : index
    %25 = vector.load %arg3[%c0_23, %c1_24, %c0_25, %c0_26, %c0_27] : memref<2x2x2x256x128xbf16, #tpu.memory_space<vmem>>, vector<1x1x1x256x128xbf16>
    %26 = vector.shape_cast %25 : vector<1x1x1x256x128xbf16> to vector<256x128xbf16>
    %cst_28 = arith.constant dense<0.000000e+00> : vector<64x128xf32>
    %27 = tpu.matmul %24, %26, %cst_28 {dimension_numbers = #tpu.dot_dimension_numbers<[1], [0], [0], [1], [0, 0, 1, 1], [], []>} : vector<64x256xbf16>, vector<256x128xbf16>, vector<64x128xf32> -> vector<64x128xf32>
    %c0_29 = arith.constant 0 : index
    %c0_30 = arith.constant 0 : index
    %c128_31 = arith.constant 128 : index
    %28 = vector.load %arg2[%c0_29, %c0_30, %c128_31] : memref<1x80x384xbf16, #tpu.memory_space<vmem>>, vector<1x64x256xbf16>
    %29 = vector.shape_cast %28 : vector<1x64x256xbf16> to vector<64x256xbf16>
    %c0_32 = arith.constant 0 : index
    %c1_33 = arith.constant 1 : index
    %c1_34 = arith.constant 1 : index
    %c0_35 = arith.constant 0 : index
    %c0_36 = arith.constant 0 : index
    %30 = vector.load %arg3[%c0_32, %c1_33, %c1_34, %c0_35, %c0_36] : memref<2x2x2x256x128xbf16, #tpu.memory_space<vmem>>, vector<1x1x1x256x128xbf16>
    %31 = vector.shape_cast %30 : vector<1x1x1x256x128xbf16> to vector<256x128xbf16>
    %cst_37 = arith.constant dense<0.000000e+00> : vector<64x128xf32>
    %32 = tpu.matmul %29, %31, %cst_37 {dimension_numbers = #tpu.dot_dimension_numbers<[1], [0], [0], [1], [0, 0, 1, 1], [], []>} : vector<64x256xbf16>, vector<256x128xbf16>, vector<64x128xf32> -> vector<64x128xf32>
    %33 = arith.addf %27, %32 : vector<64x128xf32>
    %cst_38 = arith.constant dense<0.000000e+00> : vector<128xf32>
    %34 = vector.multi_reduction <add>, %33, %cst_38 [0] : vector<64x128xf32> to vector<128xf32>
    %35 = vector.shape_cast %34 : vector<128xf32> to vector<1x128xf32>
    %36 = arith.addf %15, %35 : vector<1x128xf32>
    %37 = arith.mulf %33, %33 : vector<64x128xf32>
    %cst_39 = arith.constant dense<0.000000e+00> : vector<128xf32>
    %38 = vector.multi_reduction <add>, %37, %cst_39 [0] : vector<64x128xf32> to vector<128xf32>
    %39 = vector.shape_cast %38 : vector<128xf32> to vector<1x128xf32>
    %40 = arith.addf %19, %39 : vector<1x128xf32>
    %c0_40 = arith.constant 0 : index
    %c0_41 = arith.constant 0 : index
    %c128_42 = arith.constant 128 : index
    %41 = vector.load %arg5[%c0_40, %c0_41, %c128_42] : memref<2x64x256xf32, #tpu.memory_space<vmem>>, vector<1x64x128xf32>
    %42 = vector.shape_cast %41 : vector<1x64x128xf32> to vector<64x128xf32>
    %43 = vector.shape_cast %33 : vector<64x128xf32> to vector<1x64x128xf32>
    tpu.vector_store %arg5[%c0_40, %c0_41, %c128_42], %43 {strides = array<i32>} : memref<2x64x256xf32, #tpu.memory_space<vmem>>, vector<1x64x128xf32>,
    %c0_43 = arith.constant 0 : index
    %c8_44 = arith.constant 8 : index
    %c0_45 = arith.constant 0 : index
    %44 = vector.load %arg2[%c0_43, %c8_44, %c0_45] : memref<1x80x384xbf16, #tpu.memory_space<vmem>>, vector<1x64x256xbf16>
    %45 = vector.shape_cast %44 : vector<1x64x256xbf16> to vector<64x256xbf16>
    %c1_46 = arith.constant 1 : index
    %c0_47 = arith.constant 0 : index
    %c0_48 = arith.constant 0 : index
    %c0_49 = arith.constant 0 : index
    %c0_50 = arith.constant 0 : index
    %46 = vector.load %arg3[%c1_46, %c0_47, %c0_48, %c0_49, %c0_50] : memref<2x2x2x256x128xbf16, #tpu.memory_space<vmem>>, vector<1x1x1x256x128xbf16>
    %47 = vector.shape_cast %46 : vector<1x1x1x256x128xbf16> to vector<256x128xbf16>
    %cst_51 = arith.constant dense<0.000000e+00> : vector<64x128xf32>
    %48 = tpu.matmul %45, %47, %cst_51 {dimension_numbers = #tpu.dot_dimension_numbers<[1], [0], [0], [1], [0, 0, 1, 1], [], []>} : vector<64x256xbf16>, vector<256x128xbf16>, vector<64x128xf32> -> vector<64x128xf32>
    %c0_52 = arith.constant 0 : index
    %c16 = arith.constant 16 : index
    %c0_53 = arith.constant 0 : index
    %49 = vector.load %arg2[%c0_52, %c16, %c0_53] : memref<1x80x384xbf16, #tpu.memory_space<vmem>>, vector<1x64x256xbf16>
    %50 = vector.shape_cast %49 : vector<1x64x256xbf16> to vector<64x256xbf16>
    %c1_54 = arith.constant 1 : index
    %c0_55 = arith.constant 0 : index
    %c1_56 = arith.constant 1 : index
    %c0_57 = arith.constant 0 : index
    %c0_58 = arith.constant 0 : index
    %51 = vector.load %arg3[%c1_54, %c0_55, %c1_56, %c0_57, %c0_58] : memref<2x2x2x256x128xbf16, #tpu.memory_space<vmem>>, vector<1x1x1x256x128xbf16>
    %52 = vector.shape_cast %51 : vector<1x1x1x256x128xbf16> to vector<256x128xbf16>
    %cst_59 = arith.constant dense<0.000000e+00> : vector<64x128xf32>
    %53 = tpu.matmul %50, %52, %cst_59 {dimension_numbers = #tpu.dot_dimension_numbers<[1], [0], [0], [1], [0, 0, 1, 1], [], []>} : vector<64x256xbf16>, vector<256x128xbf16>, vector<64x128xf32> -> vector<64x128xf32>
    %54 = arith.addf %48, %53 : vector<64x128xf32>
    %cst_60 = arith.constant dense<0.000000e+00> : vector<128xf32>
    %55 = vector.multi_reduction <add>, %54, %cst_60 [0] : vector<64x128xf32> to vector<128xf32>
    %56 = vector.shape_cast %55 : vector<128xf32> to vector<1x128xf32>
    %57 = arith.addf %36, %56 : vector<1x128xf32>
    %58 = arith.mulf %54, %54 : vector<64x128xf32>
    %cst_61 = arith.constant dense<0.000000e+00> : vector<128xf32>
    %59 = vector.multi_reduction <add>, %58, %cst_61 [0] : vector<64x128xf32> to vector<128xf32>
    %60 = vector.shape_cast %59 : vector<128xf32> to vector<1x128xf32>
    %61 = arith.addf %40, %60 : vector<1x128xf32>
    %c1_62 = arith.constant 1 : index
    %c0_63 = arith.constant 0 : index
    %c0_64 = arith.constant 0 : index
    %62 = vector.load %arg5[%c1_62, %c0_63, %c0_64] : memref<2x64x256xf32, #tpu.memory_space<vmem>>, vector<1x64x128xf32>
    %63 = vector.shape_cast %62 : vector<1x64x128xf32> to vector<64x128xf32>
    %64 = vector.shape_cast %54 : vector<64x128xf32> to vector<1x64x128xf32>
    tpu.vector_store %arg5[%c1_62, %c0_63, %c0_64], %64 {strides = array<i32>} : memref<2x64x256xf32, #tpu.memory_space<vmem>>, vector<1x64x128xf32>,
    %c0_65 = arith.constant 0 : index
    %c8_66 = arith.constant 8 : index
    %c128_67 = arith.constant 128 : index
    %65 = vector.load %arg2[%c0_65, %c8_66, %c128_67] : memref<1x80x384xbf16, #tpu.memory_space<vmem>>, vector<1x64x256xbf16>
    %66 = vector.shape_cast %65 : vector<1x64x256xbf16> to vector<64x256xbf16>
    %c1_68 = arith.constant 1 : index
    %c1_69 = arith.constant 1 : index
    %c0_70 = arith.constant 0 : index
    %c0_71 = arith.constant 0 : index
    %c0_72 = arith.constant 0 : index
    %67 = vector.load %arg3[%c1_68, %c1_69, %c0_70, %c0_71, %c0_72] : memref<2x2x2x256x128xbf16, #tpu.memory_space<vmem>>, vector<1x1x1x256x128xbf16>
    %68 = vector.shape_cast %67 : vector<1x1x1x256x128xbf16> to vector<256x128xbf16>
    %cst_73 = arith.constant dense<0.000000e+00> : vector<64x128xf32>
    %69 = tpu.matmul %66, %68, %cst_73 {dimension_numbers = #tpu.dot_dimension_numbers<[1], [0], [0], [1], [0, 0, 1, 1], [], []>} : vector<64x256xbf16>, vector<256x128xbf16>, vector<64x128xf32> -> vector<64x128xf32>
    %c0_74 = arith.constant 0 : index
    %c16_75 = arith.constant 16 : index
    %c128_76 = arith.constant 128 : index
    %70 = vector.load %arg2[%c0_74, %c16_75, %c128_76] : memref<1x80x384xbf16, #tpu.memory_space<vmem>>, vector<1x64x256xbf16>
    %71 = vector.shape_cast %70 : vector<1x64x256xbf16> to vector<64x256xbf16>
    %c1_77 = arith.constant 1 : index
    %c1_78 = arith.constant 1 : index
    %c1_79 = arith.constant 1 : index
    %c0_80 = arith.constant 0 : index
    %c0_81 = arith.constant 0 : index
    %72 = vector.load %arg3[%c1_77, %c1_78, %c1_79, %c0_80, %c0_81] : memref<2x2x2x256x128xbf16, #tpu.memory_space<vmem>>, vector<1x1x1x256x128xbf16>
    %73 = vector.shape_cast %72 : vector<1x1x1x256x128xbf16> to vector<256x128xbf16>
    %cst_82 = arith.constant dense<0.000000e+00> : vector<64x128xf32>
    %74 = tpu.matmul %71, %73, %cst_82 {dimension_numbers = #tpu.dot_dimension_numbers<[1], [0], [0], [1], [0, 0, 1, 1], [], []>} : vector<64x256xbf16>, vector<256x128xbf16>, vector<64x128xf32> -> vector<64x128xf32>
    %75 = arith.addf %69, %74 : vector<64x128xf32>
    %cst_83 = arith.constant dense<0.000000e+00> : vector<128xf32>
    %76 = vector.multi_reduction <add>, %75, %cst_83 [0] : vector<64x128xf32> to vector<128xf32>
    %77 = vector.shape_cast %76 : vector<128xf32> to vector<1x128xf32>
    %78 = arith.addf %57, %77 : vector<1x128xf32>
    %79 = arith.mulf %75, %75 : vector<64x128xf32>
    %cst_84 = arith.constant dense<0.000000e+00> : vector<128xf32>
    %80 = vector.multi_reduction <add>, %79, %cst_84 [0] : vector<64x128xf32> to vector<128xf32>
    %81 = vector.shape_cast %80 : vector<128xf32> to vector<1x128xf32>
    %82 = arith.addf %61, %81 : vector<1x128xf32>
    %c1_85 = arith.constant 1 : index
    %c0_86 = arith.constant 0 : index
    %c128_87 = arith.constant 128 : index
    %83 = vector.load %arg5[%c1_85, %c0_86, %c128_87] : memref<2x64x256xf32, #tpu.memory_space<vmem>>, vector<1x64x128xf32>
    %84 = vector.shape_cast %83 : vector<1x64x128xf32> to vector<64x128xf32>
    %85 = vector.shape_cast %75 : vector<64x128xf32> to vector<1x64x128xf32>
    tpu.vector_store %arg5[%c1_85, %c0_86, %c128_87], %85 {strides = array<i32>} : memref<2x64x256xf32, #tpu.memory_space<vmem>>, vector<1x64x128xf32>,
    %cst_88 = arith.constant 2.560000e+02 : f32
    %86 = vector.broadcast %cst_88 : f32 to vector<1x128xf32>
    %87 = arith.divf %78, %86 : vector<1x128xf32>
    %cst_89 = arith.constant 2.560000e+02 : f32
    %88 = vector.broadcast %cst_89 : f32 to vector<1x128xf32>
    %89 = arith.divf %82, %88 : vector<1x128xf32>
    %90 = arith.mulf %87, %87 : vector<1x128xf32>
    %91 = arith.subf %89, %90 : vector<1x128xf32>
    %cst_90 = arith.constant 0.000000e+00 : f32
    %92 = vector.broadcast %cst_90 : f32 to vector<1x128xf32>
    %93 = arith.maximumf %91, %92 : vector<1x128xf32>
    %cst_91 = arith.constant 9.99999974E-6 : f32
    %94 = vector.broadcast %cst_91 : f32 to vector<1x128xf32>
    %95 = arith.addf %93, %94 : vector<1x128xf32>
    %96 = math.rsqrt %95 : vector<1x128xf32>
    %c0_92 = arith.constant 0 : index
    %c0_93 = arith.constant 0 : index
    %c0_94 = arith.constant 0 : index
    %97 = vector.load %arg5[%c0_92, %c0_93, %c0_94] : memref<2x64x256xf32, #tpu.memory_space<vmem>>, vector<1x64x128xf32>
    %98 = vector.shape_cast %97 : vector<1x64x128xf32> to vector<64x128xf32>
    %99 = vector.broadcast %87 : vector<1x128xf32> to vector<64x128xf32>
    %100 = arith.subf %98, %99 : vector<64x128xf32>
    %101 = vector.broadcast %96 : vector<1x128xf32> to vector<64x128xf32>
    %102 = arith.mulf %100, %101 : vector<64x128xf32>
    %cst_95 = arith.constant 0.000000e+00 : f32
    %103 = vector.broadcast %cst_95 : f32 to vector<64x128xf32>
    %104 = arith.maximumf %102, %103 : vector<64x128xf32>
    %105 = arith.truncf %104 : vector<64x128xf32> to vector<64x128xbf16>
    %c0_96 = arith.constant 0 : index
    %c0_97 = arith.constant 0 : index
    %c0_98 = arith.constant 0 : index
    %c0_99 = arith.constant 0 : index
    %c0_100 = arith.constant 0 : index
    %106 = vector.load %arg4[%c0_96, %c0_97, %c0_98, %c0_99, %c0_100] : memref<1x1x2x64x256xbf16, #tpu.memory_space<vmem>>, vector<1x1x1x64x128xbf16>
    %107 = vector.shape_cast %106 : vector<1x1x1x64x128xbf16> to vector<64x128xbf16>
    %108 = vector.shape_cast %105 : vector<64x128xbf16> to vector<1x1x1x64x128xbf16>
    tpu.vector_store %arg4[%c0_96, %c0_97, %c0_98, %c0_99, %c0_100], %108 {strides = array<i32>} : memref<1x1x2x64x256xbf16, #tpu.memory_space<vmem>>, vector<1x1x1x64x128xbf16>,
    %c0_101 = arith.constant 0 : index
    %c0_102 = arith.constant 0 : index
    %c128_103 = arith.constant 128 : index
    %109 = vector.load %arg5[%c0_101, %c0_102, %c128_103] : memref<2x64x256xf32, #tpu.memory_space<vmem>>, vector<1x64x128xf32>
    %110 = vector.shape_cast %109 : vector<1x64x128xf32> to vector<64x128xf32>
    %111 = vector.broadcast %87 : vector<1x128xf32> to vector<64x128xf32>
    %112 = arith.subf %110, %111 : vector<64x128xf32>
    %113 = vector.broadcast %96 : vector<1x128xf32> to vector<64x128xf32>
    %114 = arith.mulf %112, %113 : vector<64x128xf32>
    %cst_104 = arith.constant 0.000000e+00 : f32
    %115 = vector.broadcast %cst_104 : f32 to vector<64x128xf32>
    %116 = arith.maximumf %114, %115 : vector<64x128xf32>
    %117 = arith.truncf %116 : vector<64x128xf32> to vector<64x128xbf16>
    %c0_105 = arith.constant 0 : index
    %c0_106 = arith.constant 0 : index
    %c0_107 = arith.constant 0 : index
    %c0_108 = arith.constant 0 : index
    %c128_109 = arith.constant 128 : index
    %118 = vector.load %arg4[%c0_105, %c0_106, %c0_107, %c0_108, %c128_109] : memref<1x1x2x64x256xbf16, #tpu.memory_space<vmem>>, vector<1x1x1x64x128xbf16>
    %119 = vector.shape_cast %118 : vector<1x1x1x64x128xbf16> to vector<64x128xbf16>
    %120 = vector.shape_cast %117 : vector<64x128xbf16> to vector<1x1x1x64x128xbf16>
    tpu.vector_store %arg4[%c0_105, %c0_106, %c0_107, %c0_108, %c128_109], %120 {strides = array<i32>} : memref<1x1x2x64x256xbf16, #tpu.memory_space<vmem>>, vector<1x1x1x64x128xbf16>,
    %c1_110 = arith.constant 1 : index
    %c0_111 = arith.constant 0 : index
    %c0_112 = arith.constant 0 : index
    %121 = vector.load %arg5[%c1_110, %c0_111, %c0_112] : memref<2x64x256xf32, #tpu.memory_space<vmem>>, vector<1x64x128xf32>
    %122 = vector.shape_cast %121 : vector<1x64x128xf32> to vector<64x128xf32>
    %123 = vector.broadcast %87 : vector<1x128xf32> to vector<64x128xf32>
    %124 = arith.subf %122, %123 : vector<64x128xf32>
    %125 = vector.broadcast %96 : vector<1x128xf32> to vector<64x128xf32>
    %126 = arith.mulf %124, %125 : vector<64x128xf32>
    %cst_113 = arith.constant 0.000000e+00 : f32
    %127 = vector.broadcast %cst_113 : f32 to vector<64x128xf32>
    %128 = arith.maximumf %126, %127 : vector<64x128xf32>
    %129 = arith.truncf %128 : vector<64x128xf32> to vector<64x128xbf16>
    %c0_114 = arith.constant 0 : index
    %c0_115 = arith.constant 0 : index
    %c1_116 = arith.constant 1 : index
    %c0_117 = arith.constant 0 : index
    %c0_118 = arith.constant 0 : index
    %130 = vector.load %arg4[%c0_114, %c0_115, %c1_116, %c0_117, %c0_118] : memref<1x1x2x64x256xbf16, #tpu.memory_space<vmem>>, vector<1x1x1x64x128xbf16>
    %131 = vector.shape_cast %130 : vector<1x1x1x64x128xbf16> to vector<64x128xbf16>
    %132 = vector.shape_cast %129 : vector<64x128xbf16> to vector<1x1x1x64x128xbf16>
    tpu.vector_store %arg4[%c0_114, %c0_115, %c1_116, %c0_117, %c0_118], %132 {strides = array<i32>} : memref<1x1x2x64x256xbf16, #tpu.memory_space<vmem>>, vector<1x1x1x64x128xbf16>,
    %c1_119 = arith.constant 1 : index
    %c0_120 = arith.constant 0 : index
    %c128_121 = arith.constant 128 : index
    %133 = vector.load %arg5[%c1_119, %c0_120, %c128_121] : memref<2x64x256xf32, #tpu.memory_space<vmem>>, vector<1x64x128xf32>
    %134 = vector.shape_cast %133 : vector<1x64x128xf32> to vector<64x128xf32>
    %135 = vector.broadcast %87 : vector<1x128xf32> to vector<64x128xf32>
    %136 = arith.subf %134, %135 : vector<64x128xf32>
    %137 = vector.broadcast %96 : vector<1x128xf32> to vector<64x128xf32>
    %138 = arith.mulf %136, %137 : vector<64x128xf32>
    %cst_122 = arith.constant 0.000000e+00 : f32
    %139 = vector.broadcast %cst_122 : f32 to vector<64x128xf32>
    %140 = arith.maximumf %138, %139 : vector<64x128xf32>
    %141 = arith.truncf %140 : vector<64x128xf32> to vector<64x128xbf16>
    %c0_123 = arith.constant 0 : index
    %c0_124 = arith.constant 0 : index
    %c1_125 = arith.constant 1 : index
    %c0_126 = arith.constant 0 : index
    %c128_127 = arith.constant 128 : index
    %142 = vector.load %arg4[%c0_123, %c0_124, %c1_125, %c0_126, %c128_127] : memref<1x1x2x64x256xbf16, #tpu.memory_space<vmem>>, vector<1x1x1x64x128xbf16>
    %143 = vector.shape_cast %142 : vector<1x1x1x64x128xbf16> to vector<64x128xbf16>
    %144 = vector.shape_cast %141 : vector<64x128xbf16> to vector<1x1x1x64x128xbf16>
    tpu.vector_store %arg4[%c0_123, %c0_124, %c1_125, %c0_126, %c128_127], %144 {strides = array<i32>} : memref<1x1x2x64x256xbf16, #tpu.memory_space<vmem>>, vector<1x1x1x64x128xbf16>,
    return
  }
  func.func @transform_0(%arg0: i32, %arg1: i32) -> (i32, i32, i32) {
    %c0_i32 = arith.constant 0 : i32
    %c0_i32_0 = arith.constant 0 : i32
    %c0_i32_1 = arith.constant 0 : i32
    return %arg1, %c0_i32, %c0_i32_0 : i32, i32, i32
  }
  func.func @transform_1(%arg0: i32, %arg1: i32) -> (i32, i32, i32, i32, i32) {
    %c0_i32 = arith.constant 0 : i32
    %c0_i32_0 = arith.constant 0 : i32
    %c0_i32_1 = arith.constant 0 : i32
    %c0_i32_2 = arith.constant 0 : i32
    %c0_i32_3 = arith.constant 0 : i32
    return %c0_i32, %c0_i32_0, %c0_i32_1, %c0_i32_2, %arg0 : i32, i32, i32, i32, i32
  }
  func.func @transform_2(%arg0: i32, %arg1: i32) -> (i32, i32, i32, i32, i32) {
    %c0_i32 = arith.constant 0 : i32
    %c0_i32_0 = arith.constant 0 : i32
    %c0_i32_1 = arith.constant 0 : i32
    %c0_i32_2 = arith.constant 0 : i32
    return %arg1, %arg0, %c0_i32, %c0_i32_0, %c0_i32_1 : i32, i32, i32, i32, i32
  }
}

</mosaic_0001>

<bundles_post_ra>
// kernel: tpu_custom_call.1
= control target key start
LH: loop header
LB: loop body
LE: loop exit
PB: predicated region body
PF: predicated region fallthrough
CT: control target
= control target key end

     0   :  { %7 = vsyncpa [#allocation4], 0  ;;  %s4130_s0 = inlined_call_operand.hbm [shape: bf16[2,80,384], index: 0, kind: input, shape index: {}]   ;;  %s4131_s1 = inlined_call_operand.hbm [shape: bf16[2,2,2,256,128], index: 1, kind: input, shape index: {}]   ;;  %s4132_s2 = inlined_call_operand.hbm [shape: bf16[2,1,2,64,256], index: 2, kind: output, shape index: {}]  }
   0x1   :  { %9 = vsyncpa [#allocation4 + $0x1], 0 }
   0x2   :  { %10 = vsyncpa [#allocation7], 0 }
   0x3   :  { %11 = vsyncpa [#allocation5], 0 }
   0x4   :  { %13 = vsyncpa [#allocation5 + $0x1], 0  ;;  %s3513_s9 = smov 0   ;;  %s3515_s10 = smov 0  }
   0x5   :  { %s3517_s11 = smov 0   ;;  %s3519_s12 = smov 0  }
   0x6   :  { %s3521_s13 = smov 0   ;;  %s3523_s14 = smov 0  }
   0x7 LB: > { %s2504_s15 = sadd.s32 4294967295, %s3488_s14   ;;  %s2505_s16 = sadd.s32 4294967294, %s3488_s14   ;;  %s3488_s14 = sphi %s3523_s14, %s19_s14   ;;  %s3484_s13 = sphi %s3521_s13, %s4155_s13   ;;  %s3480_s12 = sphi %s3519_s12, %s4154_s12   ;;  %s3476_s11 = sphi %s3517_s11, %s4153_s11   ;;  %s3472_s10 = sphi %s3515_s10, %s4152_s10   ;;  %s3468_s9 = sphi %s3513_s9, %s4151_s9  }
   0x8   : > { %p51_p0 = scmp.ne.s32.totalorder %s3472_s10, %s3468_s9  ;;  %p3547_p1 = scmp.eq.s32.totalorder %s2504_s15, 0 }
   0x9   : > { %p3551_p2 = scmp.eq.s32.totalorder %s2504_s15, 1  ;;  %p109_p3 = scmp.eq.s32.totalorder %s2505_s16, 1 }
   0xa   : > { %p3557_p4 = por %p3547_p1, %p51_p0  ;;  %p2506_p5 = scmp.ge.s32.totalorder %s3488_s14, 1 }
   0xb   : > { %p3562_p6 = por %p109_p3, %p51_p0  ;;  %p116_p7 = scmp.lt.s32.totalorder %s3488_s14, 3 }
   0xc   : > { %s129_s23 = sshll.u32 %s4131_s1, 4  ;;  %s3490_s25 = smov [#allocation6]   ;;  %s130_s23 = int_to_ptr.hbm [resolvable:$true] %s129_s23 }
   0xd   : > { %p3570_p8 = pnand %p2506_p5, %p116_p7  ;;  %s131_s26 = sshll.u32 %s3490_s25, 4  ;;  %s132_s26 = int_to_ptr.vmem [resolvable:$true] %s131_s26 }
   0xe   : > { %p2508_p11 = scmp.ge.s32.totalorder %s3488_s14, 2  ;;  %s3491_s27 = smov 64  }
   0xf   : > { %p3266_p9 = pneg %p3570_p8  ;;  %s3492_s28 = smov 4  }
  0x10   : > { %s28_s29 = sadd.s32 1, %s3484_s13  ;;  %s38_s30 = sadd.s32 1, %s3476_s11 }
  0x11   : > { %p3267_p10 = pnand %p3266_p9, %p3547_p1  ;;  %p29_p12 = scmp.ge.s32.totalorder %s28_s29, 2 }
  0x12   : > { %p45_p13 = scmp.ne.s32.totalorder %s3476_s11, %s3472_s10  ;;  %p46_p0 = scmp.eq.s32.totalorder %s3488_s14, 0 }
  0x13   : > { %3269 = dma.hbm_to_vmem [thread:$0]  (!%p3267_p10), %s130_s23, 16384, %s132_s26, [#allocation7], %s3491_s27, %s3491_s27, %s3492_s28  }
  0x14   : > { %s4157_s29 = smov (%p29_p12, %s28_s29), 0  ;;  %p47_p3 = por %p46_p0, %p45_p13 }
  0x15   : > { %p3588_p5 = por %p3551_p2, %p45_p13  ;;  %s35_s4 = ssub.s32 %s3484_s13, %s4157_s29 }
  0x16   : > { %p3279_p7 = scmp.lt.s32.totalorder %s3488_s14, 2  ;;  %p36_p9 = scmp.eq.s32.totalorder %s35_s4, 0 }
  0x17   : > { %s145_s5 = sand.u32 1, %s3476_s11   ;;  %s3256_s8 = smul.u32 120, %s3484_s13 }
  0x18   : > { %s3255_s6 = smul.u32 120, %s145_s5  ;;  %p3271_p10 = pnand %p3279_p7, %p47_p3 }
  0x19   : > { %s3597_s7 = scalar_select %p36_p9, %s3476_s11, %s38_s30  }
  0x1a   : > { %s149_s15 = scalar_lea.vmem [#allocation3], %s3255_s6  ;;  %s154_s23 = scalar_lea.hbm %s4130_s0, %s3256_s8 }
  0x1b   : > { %s157_s16 = sshll.u32 %s149_s15, 4  ;;  %s155_s18 = sshll.u32 %s154_s23, 4  ;;  %s158_s16 = int_to_ptr.vmem [resolvable:$true] %s157_s16  ;;  %s156_s18 = int_to_ptr.hbm [resolvable:$true] %s155_s18 }
  0x1c   : > { %s146_s25 = scalar_lea.sflag [#allocation4], %s145_s5  ;;  %s3493_s26 = smov 192  }
  0x1d   : > { %s3494_s27 = smov 12   ;;  %169 = sbr.rel (%p3570_p8) target bundleno = 544 (0x220), region = 28 }
  0x1e   : > { %3273 = dma.hbm_to_vmem [thread:$0]  (!%p3271_p10), %s156_s18, 1920, %s158_s16, %s146_s25, %s3493_s26, %s3493_s26, %s3494_s27  }
  0x22   : > { %s3606_s28 = sand.u32 1, %s3472_s10  }
  0x23   : > { %s3257_s30 = smul.u32 120, %s3606_s28  ;;  %s172_s4 = scalar_lea.sflag [#allocation4], %s3606_s28 }
  0x25   : > { %s3610_s6 = scalar_lea.vmem [#allocation3], %s3257_s30 }
  0x26   : > { %3455 = dma.done.wait (%p3557_p4), %s172_s4, 1920  }
  0x27   : > { %3457 = vsyncadd (%p3557_p4), %s172_s4, 4294965376 }
  0x28   : > { %3459 = dma.done.wait (%p3547_p1), [#allocation7], 16384  }
  0x29   : > { %3461 = vsyncadd (%p3547_p1), [#allocation7], 4294950912  ;;  %v3133_v0 = vld [vmem:[#allocation6 + $0xb8] sm:$0xff]  ;;  %v3132_v4 = vld [vmem:[#allocation6 + $0xb0] sm:$0xff]  ;;  %s2512_s17 = sshll.u32 %s3606_s28, 7  ;;  %s3254_s24 = sshll.u32 %s3480_s12, 7 }
  0x2a   : > { %v3141_v1 = vld [vmem:[#allocation6 + $0xf8] sm:$0xff]  ;;  %412 = vmatpush.bf16.msra.mxu0 %v3133_v0  ;;  %v3140_v5 = vld [vmem:[#allocation6 + $0xf0] sm:$0xff]  ;;  %v3131_v8 = vld [vmem:[#allocation6 + $0xa8] sm:$0xff]  ;;  %s3991_s19 = scalar_lea.vmem [#allocation8], %s2512_s17  ;;  %s2404_s15 = scalar_lea.hbm %s4132_s2, %s3254_s24 }
  0x2b   : > { %v3117_v2 = vld [vmem:[#allocation6 + $0x38] sm:$0xff]  ;;  %441 = vmatpush.bf16.msra.mxu1 %v3141_v1  ;;  %v3116_v6 = vld [vmem:[#allocation6 + $0x30] sm:$0xff]  ;;  %v3139_v9 = vld [vmem:[#allocation6 + $0xe8] sm:$0xff]  ;;  %s2405_s12 = sshll.u32 %s3991_s19, 4  ;;  %s2407_s16 = sshll.u32 %s2404_s15, 4  ;;  %s2406_s12 = int_to_ptr.vmem [resolvable:$true] %s2405_s12  ;;  %s2408_s16 = int_to_ptr.hbm [resolvable:$true] %s2407_s16 }
  0x2c   : > { %v3125_v3 = vld [vmem:[#allocation6 + $0x78] sm:$0xff]  ;;  %585 = vmatpush.bf16.msra.mxu2 %v3117_v2  ;;  %v3124_v7 = vld [vmem:[#allocation6 + $0x70] sm:$0xff]  ;;  %v3115_v10 = vld [vmem:[#allocation6 + $0x28] sm:$0xff]  ;;  %s2391_s21 = scalar_lea.sflag [#allocation5], %s3606_s28  ;;  %s3416_s22 = sshra.s32 %s2408_s16, 4  ;;  %s3417_s22 = int_to_ptr.hbm [resolvable:$true] %s3416_s22 }
  0x2d   : > { %614 = vmatpush.bf16.msra.mxu3 %v3125_v3  ;;  %v3123_v11 = vld [vmem:[#allocation6 + $0x68] sm:$0xff]  ;;  %v3130_v12 = vld [vmem:[#allocation6 + $0xa0] sm:$0xff]  ;;  %v3129_v16 = vld [vmem:[#allocation6 + $0x98] sm:$0xff]  ;;  %s3418_s23 = scalar_lea.hbm %s3417_s22, 128  ;;  %s3422_s26 = scalar_lea.hbm %s4132_s2, 256 }
  0x2e   : > { %413 = vmatpush.bf16.msra.mxu0 %v3132_v4  ;;  %v3138_v13 = vld [vmem:[#allocation6 + $0xe0] sm:$0xff]  ;;  %v3137_v17 = vld [vmem:[#allocation6 + $0xd8] sm:$0xff]  ;;  %v3128_v20 = vld [vmem:[#allocation6 + $0x90] sm:$0xff]  ;;  %p3419_p1 = scmp.ne.s32.totalorder %s3417_s22, %s3418_s23  ;;  %p3423_p8 = scmp.lt.s32.totalorder %s3417_s22, %s4132_s2 }
  0x2f   : > { %442 = vmatpush.bf16.msra.mxu1 %v3140_v5  ;;  %v3114_v14 = vld [vmem:[#allocation6 + $0x20] sm:$0xff]  ;;  %v3113_v18 = vld [vmem:[#allocation6 + $0x18] sm:$0xff]  ;;  %v3136_v21 = vld [vmem:[#allocation6 + $0xd0] sm:$0xff]  ;;  %p3424_p12 = scmp.lt.s32.totalorder %s3422_s26, %s3418_s23 }
  0x30   : > { %586 = vmatpush.bf16.msra.mxu2 %v3116_v6  ;;  %v3122_v15 = vld [vmem:[#allocation6 + $0x60] sm:$0xff]  ;;  %v3121_v19 = vld [vmem:[#allocation6 + $0x58] sm:$0xff]  ;;  %v3112_v22 = vld [vmem:[#allocation6 + $0x10] sm:$0xff]  ;;  %p3420_p2 = pnand %p3419_p1, %p3588_p5 }
  0x31   : > { %615 = vmatpush.bf16.msra.mxu3 %v3124_v7  ;;  %v3120_v23 = vld [vmem:[#allocation6 + $0x50] sm:$0xff]  ;;  %v3127_v24 = vld [vmem:[#allocation6 + $0x88] sm:$0xff]  ;;  %v3126_v35 = vld [vmem:[#allocation6 + $0x80] sm:$0xff]  ;;  %p3425_p13 = por %p3424_p12, %p3423_p8 }
  0x32   : > { %414 = vmatpush.bf16.msra.mxu0 %v3131_v8  ;;  %v3135_v25 = vld [vmem:[#allocation6 + $0xc8] sm:$0xff]  ;;  %v202_v26 = vld [vmem:[%s3610_s6 + $0xc] sm:$0xff]  ;;  %p3421_p4 = pneg %p3420_p2 }
  0x33   : > { %443 = vmatpush.bf16.msra.mxu1 %v3139_v9  ;;  %v242_v27 = vld [vmem:[%s3610_s6] sm:$0xff]  ;;  %v3623_v30 = vld [vmem:[%s3610_s6 + $0x18] sm:$0xff]  ;;  %v286_v32 = vunpack.c.l.b16 %v202_v26  ;;  %v287_v34 = vunpack.c.h.b16 %v202_v26  ;;  %v3149_v41 = vld [vmem:[#allocation6 + $0x138] sm:$0xff] }
  0x34   : > { %587 = vmatpush.bf16.msra.mxu2 %v3115_v10  ;;  %v3111_v28 = vld [vmem:[#allocation6 + $0x8] sm:$0xff]  ;;  %v284_v31 = vunpack.c.l.b16 %v242_v27  ;;  %v285_v33 = vunpack.c.h.b16 %v242_v27  ;;  %v3134_v36 = vld [vmem:[#allocation6 + $0xc0] sm:$0xff]  ;;  %v288_v37 = vunpack.c.l.b16 %v3623_v30  ;;  %v289_v38 = vunpack.c.h.b16 %v3623_v30  ;;  %v3157_v42 = vld [vmem:[#allocation6 + $0x178] sm:$0xff]  ;;  %p3426_p0 = pnand %p3425_p13, %p3421_p4 }
  0x35   : > { %616 = vmatpush.bf16.msra.mxu3 %v3123_v11  ;;  %v3119_v29 = vld [vmem:[#allocation6 + $0x48] sm:$0xff]  ;;  %v3110_v39 = vld [vmem:[#allocation6] sm:$0xff]  ;;  %v3165_v47 = vld [vmem:[#allocation6 + $0x1b8] sm:$0xff] }
  0x36   : > { %415 = vmatpush.bf16.msra.mxu0 %v3130_v12  ;;  %v3118_v40 = vld [vmem:[#allocation6 + $0x40] sm:$0xff]  ;;  %v300_v43 = vpack.c.b16 %v286_v32, %v284_v31  ;;  %v301_v44 = vpack.c.b16 %v287_v34, %v285_v33  ;;  %v3627_v45 = vpack.c.b16 %v288_v37, %v286_v32  ;;  %v3629_v46 = vpack.c.b16 %v289_v38, %v287_v34  ;;  %v3173_v48 = vld [vmem:[#allocation6 + $0x1f8] sm:$0xff]  ;;  %v3148_v49 = vld [vmem:[#allocation6 + $0x130] sm:$0xff] }
  0x37   : > { %444 = vmatpush.bf16.msra.mxu1 %v3138_v13  ;;  %v3156_v50 = vld [vmem:[#allocation6 + $0x170] sm:$0xff]  ;;  %v3147_v53 = vld [vmem:[#allocation6 + $0x128] sm:$0xff]  ;;  %v3635_v56 = vld [vmem:[%s3610_s6 + $0x30] sm:$0xff] }
  0x38   : > { %588 = vmatpush.bf16.msra.mxu2 %v3114_v14  ;;  %v3164_v51 = vld [vmem:[#allocation6 + $0x1b0] sm:$0xff]  ;;  %v3155_v54 = vld [vmem:[#allocation6 + $0x168] sm:$0xff]  ;;  %v3146_v59 = vld [vmem:[#allocation6 + $0x120] sm:$0xff]  ;;  %v292_v63 = vunpack.c.l.b16 %v3635_v56  ;;  %v293_v0 = vunpack.c.h.b16 %v3635_v56 }
  0x39   : > { %617 = vmatpush.bf16.msra.mxu3 %v3122_v15  ;;  %v3172_v52 = vld [vmem:[#allocation6 + $0x1f0] sm:$0xff]  ;;  %v3163_v57 = vld [vmem:[#allocation6 + $0x1a8] sm:$0xff]  ;;  %v3154_v60 = vld [vmem:[#allocation6 + $0x160] sm:$0xff] }
  0x3a   : > { %416 = vmatpush.bf16.msra.mxu0 %v3129_v16  ;;  %v204_v55 = vld [vmem:[%s3610_s6 + $0x24] sm:$0xff]  ;;  %v3162_v1 = vld [vmem:[#allocation6 + $0x1a0] sm:$0xff] }
  0x3b   : > { %445 = vmatpush.bf16.msra.mxu1 %v3137_v17  ;;  %v3171_v58 = vld [vmem:[#allocation6 + $0x1e8] sm:$0xff]  ;;  %v290_v61 = vunpack.c.l.b16 %v204_v55  ;;  %v291_v62 = vunpack.c.h.b16 %v204_v55  ;;  %v3170_v2 = vld [vmem:[#allocation6 + $0x1e0] sm:$0xff]  ;;  %v3145_v3 = vld [vmem:[#allocation6 + $0x118] sm:$0xff] }
  0x3c   : > { %589 = vmatpush.bf16.msra.mxu2 %v3113_v18  ;;  %v3153_v4 = vld [vmem:[#allocation6 + $0x158] sm:$0xff]  ;;  %v3144_v11 = vld [vmem:[#allocation6 + $0x110] sm:$0xff]  ;;  %v3143_v15 = vld [vmem:[#allocation6 + $0x108] sm:$0xff] }
  0x3d   : > { %618 = vmatpush.bf16.msra.mxu3 %v3121_v19  ;;  %v3639_v5 = vpack.c.b16 %v290_v61, %v288_v37  ;;  %v3641_v6 = vpack.c.b16 %v291_v62, %v289_v38  ;;  %v3643_v7 = vpack.c.b16 %v292_v63, %v290_v61  ;;  %v3645_v8 = vpack.c.b16 %v293_v0, %v291_v62  ;;  %v3161_v9 = vld [vmem:[#allocation6 + $0x198] sm:$0xff]  ;;  %v3152_v12 = vld [vmem:[#allocation6 + $0x150] sm:$0xff]  ;;  %v3151_v16 = vld [vmem:[#allocation6 + $0x148] sm:$0xff] }
  0x3e   : > { %417 = vmatpush.bf16.msra.mxu0 %v3128_v20  ;;  %v3169_v10 = vld [vmem:[#allocation6 + $0x1d8] sm:$0xff]  ;;  %v3160_v13 = vld [vmem:[#allocation6 + $0x190] sm:$0xff]  ;;  %v3159_v19 = vld [vmem:[#allocation6 + $0x188] sm:$0xff] }
  0x3f   : > { %446 = vmatpush.bf16.msra.mxu1 %v3136_v21  ;;  %v3168_v14 = vld [vmem:[#allocation6 + $0x1d0] sm:$0xff]  ;;  %v3167_v20 = vld [vmem:[#allocation6 + $0x1c8] sm:$0xff]  ;;  %v3142_v21 = vld [vmem:[#allocation6 + $0x100] sm:$0xff] }
  0x40   : > { %590 = vmatpush.bf16.msra.mxu2 %v3112_v22  ;;  %v206_v17 = vld [vmem:[%s3610_s6 + $0x3c] sm:$0xff]  ;;  %v207_v18 = vld [vmem:[%s3610_s6 + $0x48] sm:$0xff]  ;;  %v687_v61 = vld [vmem:[%s3610_s6 + $0x10] sm:$0xff] }
  0x41   : > { %619 = vmatpush.bf16.msra.mxu3 %v3120_v23  ;;  %v3150_v22 = vld [vmem:[#allocation6 + $0x140] sm:$0xff]  ;;  %v294_v23 = vunpack.c.l.b16 %v206_v17  ;;  %v297_v26 = vunpack.c.h.b16 %v207_v18  ;;  %v3181_v33 = vld [vmem:[#allocation6 + $0x238] sm:$0xff]  ;;  %v3180_v37 = vld [vmem:[#allocation6 + $0x230] sm:$0xff] }
  0x42   : > { %418 = vmatpush.bf16.msra.mxu0 %v3127_v24  ;;  %v295_v24 = vunpack.c.h.b16 %v206_v17  ;;  %v3158_v27 = vld [vmem:[#allocation6 + $0x180] sm:$0xff]  ;;  %v3189_v34 = vld [vmem:[#allocation6 + $0x278] sm:$0xff]  ;;  %v3188_v38 = vld [vmem:[#allocation6 + $0x270] sm:$0xff] }
  0x43   : > { %447 = vmatpush.bf16.msra.mxu1 %v3135_v25  ;;  %v296_v25 = vunpack.c.l.b16 %v207_v18  ;;  %v3195_v55 = vld [vmem:[#allocation6 + $0x2a8] sm:$0xff]  ;;  %v3201_v17 = vld [vmem:[#allocation6 + $0x2d8] sm:$0xff]  ;;  %v3176_v18 = vld [vmem:[#allocation6 + $0x210] sm:$0xff] }
  0x44   : > { %591 = vmatpush.bf16.msra.mxu2 %v3111_v28  ;;  %v3166_v28 = vld [vmem:[#allocation6 + $0x1c0] sm:$0xff]  ;;  %v3655_v30 = vpack.c.b16 %v295_v24, %v293_v0  ;;  %v3659_v32 = vpack.c.b16 %v297_v26, %v295_v24  ;;  %v3203_v56 = vld [vmem:[#allocation6 + $0x2e8] sm:$0xff] }
  0x45   : > { %620 = vmatpush.bf16.msra.mxu3 %v3119_v29  ;;  %v3653_v29 = vpack.c.b16 %v294_v23, %v292_v63  ;;  %v3657_v31 = vpack.c.b16 %v296_v25, %v294_v23  ;;  %v728_v62 = vld [vmem:[%s3610_s6 + $0x4] sm:$0xff]  ;;  %v688_v63 = vld [vmem:[%s3610_s6 + $0x1c] sm:$0xff]  ;;  %v690_v23 = vld [vmem:[%s3610_s6 + $0x34] sm:$0xff] }
  0x46   : > { %419 = vmatpush.bf16.msra.mxu0 %v3126_v35  ;;  %v3197_v35 = vld [vmem:[#allocation6 + $0x2b8] sm:$0xff]  ;;  %v770_v0 = vunpack.c.l.b16 %v728_v62 }
  0x47   : > { %448 = vmatpush.bf16.msra.mxu1 %v3134_v36  ;;  %v3205_v36 = vld [vmem:[#allocation6 + $0x2f8] sm:$0xff] }
  0x48   : > { %592 = vmatpush.bf16.msra.mxu2 %v3110_v39  ;;  %v3196_v39 = vld [vmem:[#allocation6 + $0x2b0] sm:$0xff] }
  0x49   : > { %621 = vmatpush.bf16.msra.mxu3 %v3118_v40  ;;  %420 = vmatmul.bf16.vlgmr.msra.gmra.mxu0 %v300_v43  ;;  %v3204_v40 = vld [vmem:[#allocation6 + $0x2f0] sm:$0xff] }
  0x4a   : > { %449 = vmatmul.bf16.vlgmr.msra.gmra.mxu1 %v301_v44  ;;  %898 = vmatpush.bf16.msrb.mxu0 %v3165_v47 }
  0x4b   : > { %593 = vmatmul.bf16.vlgmr.msra.gmra.mxu2 %v3627_v45  ;;  %927 = vmatpush.bf16.msrb.mxu1 %v3173_v48 }
  0x4c   : > { %1071 = vmatpush.bf16.msrb.mxu2 %v3149_v41  ;;  %622 = vmatmul.bf16.vlgmr.msra.gmra.mxu3 %v3629_v46  ;;  %v208_v41 = vld [vmem:[%s3610_s6 + $0x54] sm:$0xff] }
  0x4d   : > { %1100 = vmatpush.bf16.msrb.mxu3 %v3157_v42  ;;  %v3667_v42 = vld [vmem:[%s3610_s6 + $0x60] sm:$0xff]  ;;  %v298_v43 = vunpack.c.l.b16 %v208_v41  ;;  %v299_v44 = vunpack.c.h.b16 %v208_v41  ;;  %v3182_v41 = vld [vmem:[#allocation6 + $0x240] sm:$0xff] }
  0x4e   : > { %899 = vmatpush.bf16.msrb.mxu0 %v3164_v51  ;;  %v471_v47 = vunpack.c.l.b16 %v3667_v42  ;;  %v472_v48 = vunpack.c.h.b16 %v3667_v42 }
  0x4f   : > { %928 = vmatpush.bf16.msrb.mxu1 %v3172_v52 }
  0x50   : > { %1072 = vmatpush.bf16.msrb.mxu2 %v3148_v49  ;;  %v3671_v49 = vpack.c.b16 %v298_v43, %v296_v25  ;;  %v3677_v51 = vpack.c.b16 %v471_v47, %v298_v43  ;;  %v3681_v52 = vpack.c.b16 %v472_v48, %v299_v44  ;;  %v3190_v43 = vld [vmem:[#allocation6 + $0x280] sm:$0xff] }
  0x51   : > { %1101 = vmatpush.bf16.msrb.mxu3 %v3156_v50  ;;  %v3673_v50 = vpack.c.b16 %v299_v44, %v297_v26  ;;  %v778_v26 = vunpack.c.l.b16 %v690_v23  ;;  %v3198_v44 = vld [vmem:[#allocation6 + $0x2c0] sm:$0xff] }
  0x52   : > { %900 = vmatpush.bf16.msrb.mxu0 %v3163_v57  ;;  %v3178_v57 = vld [vmem:[#allocation6 + $0x220] sm:$0xff] }
  0x53   : > { %929 = vmatpush.bf16.msrb.mxu1 %v3171_v58  ;;  %v3186_v58 = vld [vmem:[#allocation6 + $0x260] sm:$0xff] }
  0x54   : > { %1073 = vmatpush.bf16.msrb.mxu2 %v3147_v53  ;;  %v3179_v53 = vld [vmem:[#allocation6 + $0x228] sm:$0xff] }
  0x55   : > { %1102 = vmatpush.bf16.msrb.mxu3 %v3155_v54  ;;  %v3187_v54 = vld [vmem:[#allocation6 + $0x268] sm:$0xff] }
  0x56   : > { %901 = vmatpush.bf16.msrb.mxu0 %v3162_v1  ;;  %v772_v1 = vunpack.c.l.b16 %v687_v61 }
  0x57   : > { %930 = vmatpush.bf16.msrb.mxu1 %v3170_v2  ;;  %v771_v2 = vunpack.c.h.b16 %v728_v62 }
  0x58   : > { %1074 = vmatpush.bf16.msrb.mxu2 %v3146_v59  ;;  %v3194_v59 = vld [vmem:[#allocation6 + $0x2a0] sm:$0xff] }
  0x59   : > { %1103 = vmatpush.bf16.msrb.mxu3 %v3154_v60  ;;  %425 = vmatmul.bf16.gmra.mxu0 %v3639_v5  ;;  %v3202_v60 = vld [vmem:[#allocation6 + $0x2e0] sm:$0xff] }
  0x5a   : > { %454 = vmatmul.bf16.gmra.mxu1 %v3641_v6  ;;  %902 = vmatpush.bf16.msrb.mxu0 %v3161_v9  ;;  %v775_v9 = vunpack.c.h.b16 %v688_v63 }
  0x5b   : > { %598 = vmatmul.bf16.gmra.mxu2 %v3643_v7  ;;  %931 = vmatpush.bf16.msrb.mxu1 %v3169_v10  ;;  %v786_v10 = vpack.c.b16 %v772_v1, %v770_v0  ;;  %v3229_v0 = vld [vmem:[#allocation6 + $0x378] sm:$0xff] }
  0x5c   : > { %1075 = vmatpush.bf16.msrb.mxu2 %v3145_v3  ;;  %627 = vmatmul.bf16.gmra.mxu3 %v3645_v8  ;;  %v773_v3 = vunpack.c.h.b16 %v687_v61 }
  0x5d   : > { %1104 = vmatpush.bf16.msrb.mxu3 %v3153_v4  ;;  %v774_v4 = vunpack.c.l.b16 %v688_v63  ;;  %v3221_v63 = vld [vmem:[#allocation6 + $0x338] sm:$0xff] }
  0x5e   : > { %903 = vmatpush.bf16.msrb.mxu0 %v3160_v13  ;;  %v960_v13 = vpack.c.b16 %v775_v9, %v773_v3 }
  0x5f   : > { %932 = vmatpush.bf16.msrb.mxu1 %v3168_v14  ;;  %v3177_v14 = vld [vmem:[#allocation6 + $0x218] sm:$0xff] }
  0x60   : > { %1076 = vmatpush.bf16.msrb.mxu2 %v3144_v11  ;;  %v787_v11 = vpack.c.b16 %v773_v3, %v771_v2  ;;  %v694_v2 = vld [vmem:[%s3610_s6 + $0x64] sm:$0xff] }
  0x61   : > { %1105 = vmatpush.bf16.msrb.mxu3 %v3152_v12  ;;  %v959_v12 = vpack.c.b16 %v774_v4, %v772_v1  ;;  %v693_v1 = vld [vmem:[%s3610_s6 + $0x58] sm:$0xff] }
  0x62   : > { %904 = vmatpush.bf16.msrb.mxu0 %v3159_v19  ;;  %v3184_v19 = vld [vmem:[#allocation6 + $0x250] sm:$0xff]  ;;  %v784_v3 = vunpack.c.l.b16 %v693_v1 }
  0x63   : > { %933 = vmatpush.bf16.msrb.mxu1 %v3167_v20  ;;  %v3192_v20 = vld [vmem:[#allocation6 + $0x290] sm:$0xff] }
  0x64   : > { %1077 = vmatpush.bf16.msrb.mxu2 %v3143_v15  ;;  %v3185_v15 = vld [vmem:[#allocation6 + $0x258] sm:$0xff] }
  0x65   : > { %1106 = vmatpush.bf16.msrb.mxu3 %v3151_v16  ;;  %v3193_v16 = vld [vmem:[#allocation6 + $0x298] sm:$0xff] }
  0x66   : > { %905 = vmatpush.bf16.msrb.mxu0 %v3158_v27  ;;  %v779_v27 = vunpack.c.h.b16 %v690_v23  ;;  %v3243_v23 = vld [vmem:[#allocation6 + $0x3a8] sm:$0xff] }
  0x67   : > { %934 = vmatpush.bf16.msrb.mxu1 %v3166_v28 }
  0x68   : > { %1078 = vmatpush.bf16.msrb.mxu2 %v3142_v21  ;;  %v3200_v21 = vld [vmem:[#allocation6 + $0x2d0] sm:$0xff] }
  0x69   : > { %1107 = vmatpush.bf16.msrb.mxu3 %v3150_v22  ;;  %430 = vmatmul.bf16.gmra.mxu0 %v3653_v29  ;;  %v689_v22 = vld [vmem:[%s3610_s6 + $0x28] sm:$0xff] }
  0x6a   : > { %459 = vmatmul.bf16.gmra.mxu1 %v3655_v30  ;;  %1384 = vmatpush.bf16.msra.mxu0 %v3197_v35  ;;  %v776_v24 = vunpack.c.l.b16 %v689_v22  ;;  %v777_v25 = vunpack.c.h.b16 %v689_v22  ;;  %v3227_v22 = vld [vmem:[#allocation6 + $0x368] sm:$0xff] }
  0x6b   : > { %603 = vmatmul.bf16.gmra.mxu2 %v3657_v31  ;;  %1413 = vmatpush.bf16.msra.mxu1 %v3205_v36  ;;  %v3175_v36 = vld [vmem:[#allocation6 + $0x208] sm:$0xff] }
  0x6c   : > { %632 = vmatmul.bf16.gmra.mxu3 %v3659_v32  ;;  %1557 = vmatpush.bf16.msra.mxu2 %v3181_v33  ;;  %v788_v28 = vpack.c.b16 %v776_v24, %v774_v4  ;;  %v789_v33 = vpack.c.b16 %v777_v25, %v775_v9  ;;  %v962_v35 = vpack.c.b16 %v779_v27, %v777_v25  ;;  %v785_v4 = vunpack.c.h.b16 %v693_v1  ;;  %v3218_v25 = vld [vmem:[#allocation6 + $0x320] sm:$0xff]  ;;  %v3240_v1 = vld [vmem:[#allocation6 + $0x390] sm:$0xff] }
  0x6d   : > { %1586 = vmatpush.bf16.msra.mxu3 %v3189_v34  ;;  %v961_v34 = vpack.c.b16 %v778_v26, %v776_v24  ;;  %v957_v9 = vunpack.c.l.b16 %v694_v2  ;;  %v3251_v24 = vld [vmem:[#allocation6 + $0x3e8] sm:$0xff] }
  0x6e   : > { %1385 = vmatpush.bf16.msra.mxu0 %v3196_v39  ;;  %v3199_v39 = vld [vmem:[#allocation6 + $0x2c8] sm:$0xff] }
  0x6f   : > { %1414 = vmatpush.bf16.msra.mxu1 %v3204_v40  ;;  %v3174_v40 = vld [vmem:[#allocation6 + $0x200] sm:$0xff] }
  0x70   : > { %1558 = vmatpush.bf16.msra.mxu2 %v3180_v37  ;;  %v3183_v37 = vld [vmem:[#allocation6 + $0x248] sm:$0xff] }
  0x71   : > { %1587 = vmatpush.bf16.msra.mxu3 %v3188_v38  ;;  %v3191_v38 = vld [vmem:[#allocation6 + $0x288] sm:$0xff] }
  0x72   : > { %1386 = vmatpush.bf16.msra.mxu0 %v3195_v55 }
  0x73   : > { %1415 = vmatpush.bf16.msra.mxu1 %v3203_v56 }
  0x74   : > { %1559 = vmatpush.bf16.msra.mxu2 %v3179_v53  ;;  %v691_v53 = vld [vmem:[%s3610_s6 + $0x40] sm:$0xff] }
  0x75   : > { %1588 = vmatpush.bf16.msra.mxu3 %v3187_v54  ;;  %v692_v54 = vld [vmem:[%s3610_s6 + $0x4c] sm:$0xff]  ;;  %v780_v55 = vunpack.c.l.b16 %v691_v53  ;;  %v781_v56 = vunpack.c.h.b16 %v691_v53 }
  0x76   : > { %1387 = vmatpush.bf16.msra.mxu0 %v3194_v59  ;;  %v3216_v53 = vld [vmem:[#allocation6 + $0x310] sm:$0xff] }
  0x77   : > { %1416 = vmatpush.bf16.msra.mxu1 %v3202_v60  ;;  %v790_v59 = vpack.c.b16 %v780_v55, %v778_v26  ;;  %v791_v60 = vpack.c.b16 %v781_v56, %v779_v27  ;;  %v3226_v26 = vld [vmem:[#allocation6 + $0x360] sm:$0xff] }
  0x78   : > { %1560 = vmatpush.bf16.msra.mxu2 %v3178_v57  ;;  %v782_v57 = vunpack.c.l.b16 %v692_v54 }
  0x79   : > { %435 = vmatmul.bf16.gmra.mxu0 %v3671_v49  ;;  %1589 = vmatpush.bf16.msra.mxu3 %v3186_v58  ;;  %v783_v58 = vunpack.c.h.b16 %v692_v54 }
  0x7a   : > { %464 = vmatmul.bf16.gmra.mxu1 %v3673_v50  ;;  %1388 = vmatpush.bf16.msra.mxu0 %v3193_v16  ;;  %v963_v61 = vpack.c.b16 %v782_v57, %v780_v55  ;;  %v3224_v55 = vld [vmem:[#allocation6 + $0x350] sm:$0xff] }
  0x7b   : > { %608 = vmatmul.bf16.gmra.mxu2 %v3677_v51  ;;  %1417 = vmatpush.bf16.msra.mxu1 %v3201_v17  ;;  %v964_v62 = vpack.c.b16 %v783_v58, %v781_v56  ;;  %v793_v16 = vpack.c.b16 %v785_v4, %v783_v58  ;;  %v965_v17 = vpack.c.b16 %v957_v9, %v784_v3 }
  0x7c   : > { %637 = vmatmul.bf16.gmra.mxu3 %v3681_v52  ;;  %1561 = vmatpush.bf16.msra.mxu2 %v3177_v14  ;;  %v3228_v14 = vld [vmem:[#allocation6 + $0x370] sm:$0xff] }
  0x7d   : > { %1590 = vmatpush.bf16.msra.mxu3 %v3185_v15  ;;  %v792_v15 = vpack.c.b16 %v784_v3, %v782_v57  ;;  %v3215_v3 = vld [vmem:[#allocation6 + $0x308] sm:$0xff] }
  0x7e   : > { %1389 = vmatpush.bf16.msra.mxu0 %v3192_v20  ;;  %v3252_v20 = vld [vmem:[#allocation6 + $0x3f0] sm:$0xff] }
  0x7f   : > { %1418 = vmatpush.bf16.msra.mxu1 %v3200_v21  ;;  %v3219_v21 = vld [vmem:[#allocation6 + $0x328] sm:$0xff] }
  0x80   : > { %1562 = vmatpush.bf16.msra.mxu2 %v3176_v18 }
  0x81   : > { %1591 = vmatpush.bf16.msra.mxu3 %v3184_v19  ;;  %v3244_v19 = vld [vmem:[#allocation6 + $0x3b0] sm:$0xff] }
  0x82   : > { %1390 = vmatpush.bf16.msra.mxu0 %v3191_v38 }
  0x83   : > { %1419 = vmatpush.bf16.msra.mxu1 %v3199_v39  ;;  %v3225_v39 = vld [vmem:[#allocation6 + $0x358] sm:$0xff] }
  0x84   : > { %1563 = vmatpush.bf16.msra.mxu2 %v3175_v36  ;;  %v3217_v36 = vld [vmem:[#allocation6 + $0x318] sm:$0xff] }
  0x85   : > { %1592 = vmatpush.bf16.msra.mxu3 %v3183_v37 }
  0x86   : > { %1391 = vmatpush.bf16.msra.mxu0 %v3190_v43 }
  0x87   : > { %1420 = vmatpush.bf16.msra.mxu1 %v3198_v44 }
  0x88   : > { %1564 = vmatpush.bf16.msra.mxu2 %v3174_v40 }
  0x89   : > { %906 = vmatmul.bf16.vlgmr.msrb.gmra.mxu0 %v786_v10  ;;  %1593 = vmatpush.bf16.msra.mxu3 %v3182_v41  ;;  %v958_v10 = vunpack.c.h.b16 %v694_v2  ;;  %v3248_v2 = vld [vmem:[#allocation6 + $0x3d0] sm:$0xff] }
  0x8a   : > { %935 = vmatmul.bf16.vlgmr.msrb.gmra.mxu1 %v787_v11  ;;  %v3245_v11 = vld [vmem:[#allocation6 + $0x3b8] sm:$0xff] }
  0x8b   : > { %1079 = vmatmul.bf16.vlgmr.msrb.gmra.mxu2 %v959_v12  ;;  %v3253_v12 = vld [vmem:[#allocation6 + $0x3f8] sm:$0xff]  ;;  %1878 = vmatpush.bf16.msrb.mxu0 %v3245_v11  ;;  %v966_v18 = vpack.c.b16 %v958_v10, %v785_v4 }
  0x8c   : > { %1108 = vmatmul.bf16.vlgmr.msrb.gmra.mxu3 %v960_v13  ;;  %2072 = vmatpush.bf16.msrb.mxu2 %v3221_v63  ;;  %v3220_v13 = vld [vmem:[#allocation6 + $0x330] sm:$0xff] }
  0x8d   : > { %2101 = vmatpush.bf16.msrb.mxu3 %v3229_v0  ;;  %1907 = vmatpush.bf16.msrb.mxu1 %v3253_v12 }
  0x8f   : > { %1879 = vmatpush.bf16.msrb.mxu0 %v3244_v19 }
  0x90   : > { %2073 = vmatpush.bf16.msrb.mxu2 %v3220_v13 }
  0x91   : > { %2102 = vmatpush.bf16.msrb.mxu3 %v3228_v14  ;;  %1908 = vmatpush.bf16.msrb.mxu1 %v3252_v20  ;;  %v3247_v14 = vld [vmem:[#allocation6 + $0x3c8] sm:$0xff] }
  0x93   : > { %1880 = vmatpush.bf16.msrb.mxu0 %v3243_v23 }
  0x94   : > { %2074 = vmatpush.bf16.msrb.mxu2 %v3219_v21  ;;  %v3238_v21 = vld [vmem:[#allocation6 + $0x380] sm:$0xff] }
  0x95   : > { %2103 = vmatpush.bf16.msrb.mxu3 %v3227_v22  ;;  %1909 = vmatpush.bf16.msrb.mxu1 %v3251_v24  ;;  %v3246_v22 = vld [vmem:[#allocation6 + $0x3c0] sm:$0xff] }
  0x98   : > { %2075 = vmatpush.bf16.msrb.mxu2 %v3218_v25 }
  0x99   : > { %911 = vmatmul.bf16.gmra.mxu0 %v788_v28  ;;  %2104 = vmatpush.bf16.msrb.mxu3 %v3226_v26 }
  0x9a   : > { %940 = vmatmul.bf16.gmra.mxu1 %v789_v33 }
  0x9b   : > { %1084 = vmatmul.bf16.gmra.mxu2 %v961_v34  ;;  %v3242_v34 = vld [vmem:[#allocation6 + $0x3a0] sm:$0xff] }
  0x9c   : > { %1113 = vmatmul.bf16.gmra.mxu3 %v962_v35  ;;  %v3250_v35 = vld [vmem:[#allocation6 + $0x3e0] sm:$0xff]  ;;  %1881 = vmatpush.bf16.msrb.mxu0 %v3242_v34 }
  0x9d   : > { %1910 = vmatpush.bf16.msrb.mxu1 %v3250_v35  ;;  %2076 = vmatpush.bf16.msrb.mxu2 %v3217_v36 }
  0x9e   : > { %2105 = vmatpush.bf16.msrb.mxu3 %v3225_v39 }
  0xa1   : > { %2077 = vmatpush.bf16.msrb.mxu2 %v3216_v53 }
  0xa2   : > { %2106 = vmatpush.bf16.msrb.mxu3 %v3224_v55 }
  0xa5   : > { %2078 = vmatpush.bf16.msrb.mxu2 %v3215_v3  ;;  %v2899_v3 = vld [vmem:[%s3610_s6 + $0x1c] sm:$0xf] }
  0xa9   : > { %916 = vmatmul.bf16.gmra.mxu0 %v790_v59 }
  0xaa   : > { %945 = vmatmul.bf16.gmra.mxu1 %v791_v60 }
  0xab   : > { %1089 = vmatmul.bf16.gmra.mxu2 %v963_v61 }
  0xac   : > { %1118 = vmatmul.bf16.gmra.mxu3 %v964_v62 }
  0xb9   : > { %921 = vmatmul.bf16.gmra.mxu0 %v792_v15 }
  0xba   : > { %950 = vmatmul.bf16.gmra.mxu1 %v793_v16 }
  0xbb   : > { %1094 = vmatmul.bf16.gmra.mxu2 %v965_v17  ;;  %v3214_v17 = vld [vmem:[#allocation6 + $0x300] sm:$0xff] }
  0xbc   : > { %1123 = vmatmul.bf16.gmra.mxu3 %v966_v18  ;;  %v3222_v18 = vld [vmem:[#allocation6 + $0x340] sm:$0xff]  ;;  %2079 = vmatpush.bf16.msrb.mxu2 %v3214_v17 }
  0xc6   : > { %v421_v27 = vpop.f32.mrf.mxu0 }
  0xc7   : > { %v450_v28 = vpop.f32.mrf.mxu1 }
  0xc8   : > { %v451_v33 = vadd.f32 %v450_v28, %v421_v27 }
  0xc9   : > { %1392 = vmatmul.bf16.vlgmr.msra.gmra.mxu0 %v3639_v5 }
  0xca   : > { %1421 = vmatmul.bf16.vlgmr.msra.gmra.mxu1 %v3641_v6  ;;  %v3241_v6 = vld [vmem:[#allocation6 + $0x398] sm:$0xff] }
  0xcb   : > { %1565 = vmatmul.bf16.vlgmr.msra.gmra.mxu2 %v3627_v45  ;;  %v3249_v45 = vld [vmem:[#allocation6 + $0x3d8] sm:$0xff]  ;;  %1882 = vmatpush.bf16.msrb.mxu0 %v3241_v6 }
  0xcc   : > { %1594 = vmatmul.bf16.vlgmr.msra.gmra.mxu3 %v3629_v46  ;;  %1911 = vmatpush.bf16.msrb.mxu1 %v3249_v45 }
  0xce   : > { %v594_v37 = vpop.f32.mrf.mxu2  ;;  %v423_v41 = vpop.f32.mrf.mxu0 }
  0xcf   : > { %v623_v38 = vpop.f32.mrf.mxu3  ;;  %v595_v40 = vadd.f32 %v594_v37, %v451_v33  ;;  %v452_v43 = vpop.f32.mrf.mxu1  ;;  %1883 = vmatpush.bf16.msrb.mxu0 %v3240_v1 }
  0xd0   : > { %v453_v44 = vadd.f32 %v452_v43, %v423_v41  ;;  %1912 = vmatpush.bf16.msrb.mxu1 %v3248_v2 }
  0xd1   : > { %v3700_v5 = vadd.f32 %v623_v38, %v595_v40  ;;  %v1214_v40 = vld [vmem:[%s3610_s6 + $0x6c] sm:$0xff] }
  0xd2   : > { %v1271_v43 = vunpack.c.h.b16 %v1214_v40 }
  0xd3   : > { %v657_v61 = vmul.f32 %v3700_v5, %v3700_v5 }
  0xd4   : > { %1913 = vmatpush.bf16.msrb.mxu1 %v3247_v14 }
  0xd6   : > { %v596_v46 = vpop.f32.mrf.mxu2  ;;  %v426_v57 = vpop.f32.mrf.mxu0 }
  0xd7   : > { %v625_v54 = vpop.f32.mrf.mxu3  ;;  %v597_v56 = vadd.f32 %v596_v46, %v453_v44  ;;  %v455_v58 = vpop.f32.mrf.mxu1  ;;  %v1279_v46 = vpack.c.b16 %v1271_v43, %v472_v48  ;;  %v3003_v43 = vld [vmem:[%s3610_s6 + $0x28] sm:$0xf] }
  0xd8   : > { %v456_v59 = vadd.f32 %v455_v58, %v426_v57  ;;  %1914 = vmatpush.bf16.msrb.mxu1 %v3246_v22 }
  0xd9   : > { %v3702_v60 = vadd.f32 %v625_v54, %v597_v56  ;;  %1397 = vmatmul.bf16.gmra.mxu0 %v3653_v29 }
  0xda   : > { %1426 = vmatmul.bf16.gmra.mxu1 %v3655_v30  ;;  %v3223_v30 = vld [vmem:[#allocation6 + $0x348] sm:$0xff] }
  0xdb   : > { %v643_v62 = vadd.f32 %v3702_v60, %v3700_v5  ;;  %v658_v63 = vmul.f32 %v3702_v60, %v3702_v60  ;;  %1570 = vmatmul.bf16.gmra.mxu2 %v3643_v7  ;;  %2107 = vmatpush.bf16.msrb.mxu3 %v3223_v30  ;;  %v3239_v7 = vld [vmem:[#allocation6 + $0x388] sm:$0xff]  ;;  %v2901_v30 = vld [vmem:[%s3610_s6 + $0x28] sm:$0xf0] }
  0xdc   : > { %1599 = vmatmul.bf16.gmra.mxu3 %v3645_v8  ;;  %1884 = vmatpush.bf16.msrb.mxu0 %v3239_v7 }
  0xdd   : > { %v665_v0 = vadd.f32 %v658_v63, %v657_v61 }
  0xde   : > { %v599_v29 = vpop.f32.mrf.mxu2  ;;  %v428_v10 = vpop.f32.mrf.mxu0 }
  0xdf   : > { %v628_v4 = vpop.f32.mrf.mxu3  ;;  %v600_v9 = vadd.f32 %v599_v29, %v456_v59  ;;  %v457_v11 = vpop.f32.mrf.mxu1  ;;  %2108 = vmatpush.bf16.msrb.mxu3 %v3222_v18  ;;  %v3231_v29 = vld [vmem:[%s3610_s6 + $0x24] sm:$0xf0] }
  0xe0   : > { %v458_v12 = vadd.f32 %v457_v11, %v428_v10  ;;  %1885 = vmatpush.bf16.msrb.mxu0 %v3238_v21  ;;  %v3207_v10 = vld [vmem:[%s3610_s6 + $0x18] sm:$0xf0]  ;;  %v3206_v11 = vld [vmem:[%s3610_s6 + $0x14] sm:$0xf] }
  0xe1   : > { %v3714_v13 = vadd.f32 %v628_v4, %v600_v9  ;;  %v2995_v9 = vld [vmem:[%s3610_s6 + $0x10] sm:$0xf] }
  0xe3   : > { %v644_v8 = vadd.f32 %v643_v62, %v3714_v13  ;;  %v659_v15 = vmul.f32 %v3714_v13, %v3714_v13 }
  0xe5   : > { %v666_v16 = vadd.f32 %v665_v0, %v659_v15  ;;  %v2900_v15 = vor.u32 %v3231_v29, %v2899_v3  ;;  %v2915_v29 = vld [vmem:[%s3610_s6 + $0x4c] sm:$0xf] }
  0xe6   : > { %v601_v19 = vpop.f32.mrf.mxu2  ;;  %v431_v24 = vpop.f32.mrf.mxu0 }
  0xe7   : > { %v630_v20 = vpop.f32.mrf.mxu3  ;;  %v602_v23 = vadd.f32 %v601_v19, %v458_v12  ;;  %v460_v25 = vpop.f32.mrf.mxu1  ;;  %v2997_v12 = vld [vmem:[%s3610_s6 + $0x1c] sm:$0xf0] }
  0xe8   : > { %v461_v26 = vadd.f32 %v460_v25, %v431_v24  ;;  %v3000_v21 = vor.u32 %v3206_v11, %v2997_v12  ;;  %v3013_v11 = vld [vmem:[%s3610_s6 + $0x4c] sm:$0xf0] }
  0xe9   : > { %v3719_v27 = vadd.f32 %v630_v20, %v602_v23  ;;  %1402 = vmatmul.bf16.gmra.mxu0 %v3671_v49  ;;  %v2996_v20 = vor.u32 %v3207_v10, %v2995_v9  ;;  %v3211_v9 = vld [vmem:[%s3610_s6 + $0x48] sm:$0xf0]  ;;  %v3210_v10 = vld [vmem:[%s3610_s6 + $0x44] sm:$0xf] }
  0xea   : > { %1431 = vmatmul.bf16.gmra.mxu1 %v3673_v50  ;;  %v1270_v50 = vunpack.c.l.b16 %v1214_v40  ;;  %v3233_v40 = vld [vmem:[%s3610_s6 + $0x3c] sm:$0xf0] }
  0xeb   : > { %v645_v28 = vadd.f32 %v644_v8, %v3719_v27  ;;  %v660_v33 = vmul.f32 %v3719_v27, %v3719_v27  ;;  %1575 = vmatmul.bf16.gmra.mxu2 %v3657_v31 }
  0xec   : > { %1604 = vmatmul.bf16.gmra.mxu3 %v3659_v32  ;;  %v1278_v53 = vpack.c.b16 %v1270_v50, %v471_v47  ;;  %v2909_v50 = vld [vmem:[%s3610_s6 + $0x40] sm:$0xf0] }
  0xed   : > { %v667_v34 = vadd.f32 %v666_v16, %v660_v33 }
  0xee   : > { %v604_v35 = vpop.f32.mrf.mxu2  ;;  %v433_v38 = vpop.f32.mrf.mxu0 }
  0xef   : > { %v633_v36 = vpop.f32.mrf.mxu3  ;;  %v605_v37 = vadd.f32 %v604_v35, %v461_v26  ;;  %v462_v39 = vpop.f32.mrf.mxu1 }
  0xf0   : > { %v463_v41 = vadd.f32 %v462_v39, %v433_v38  ;;  %v2907_v39 = vld [vmem:[%s3610_s6 + $0x34] sm:$0xf] }
  0xf1   : > { %v3729_v49 = vadd.f32 %v633_v36, %v605_v37 }
  0xf3   : > { %v646_v44 = vadd.f32 %v645_v28, %v3729_v49  ;;  %v661_v6 = vmul.f32 %v3729_v49, %v3729_v49 }
  0xf5   : > { %v668_v31 = vadd.f32 %v667_v34, %v661_v6  ;;  %v3208_v6 = vld [vmem:[%s3610_s6 + $0x2c] sm:$0xf] }
  0xf6   : > { %v606_v45 = vpop.f32.mrf.mxu2  ;;  %v436_v55 = vpop.f32.mrf.mxu0 }
  0xf7   : > { %v635_v32 = vpop.f32.mrf.mxu3  ;;  %v607_v54 = vadd.f32 %v606_v45, %v463_v41  ;;  %v465_v56 = vpop.f32.mrf.mxu1  ;;  %v3232_v41 = vld [vmem:[%s3610_s6 + $0x38] sm:$0xf] }
  0xf8   : > { %v466_v57 = vadd.f32 %v465_v56, %v436_v55 }
  0xf9   : > { %v3738_v58 = vadd.f32 %v635_v32, %v607_v54  ;;  %1407 = vmatmul.bf16.gmra.mxu0 %v1278_v53  ;;  %v2908_v53 = vor.u32 %v3233_v40, %v2907_v39  ;;  %v3237_v39 = vld [vmem:[%s3610_s6 + $0x6c] sm:$0xf0]  ;;  %v3236_v40 = vld [vmem:[%s3610_s6 + $0x68] sm:$0xf] }
  0xfa   : > { %1436 = vmatmul.bf16.gmra.mxu1 %v1279_v46  ;;  %v2912_v46 = vor.u32 %v3232_v41, %v2909_v50  ;;  %v2925_v41 = vld [vmem:[%s3610_s6 + $0x70] sm:$0xf0]  ;;  %v3019_v50 = vld [vmem:[%s3610_s6 + $0x58] sm:$0xf] }
  0xfb   : > { %v647_v59 = vadd.f32 %v646_v44, %v3738_v58  ;;  %v662_v61 = vmul.f32 %v3738_v58, %v3738_v58  ;;  %1580 = vmatmul.bf16.gmra.mxu2 %v3677_v51  ;;  %v3209_v44 = vld [vmem:[%s3610_s6 + $0x30] sm:$0xf0] }
  0xfc   : > { %1609 = vmatmul.bf16.gmra.mxu3 %v3681_v52  ;;  %v3230_v52 = vld [vmem:[%s3610_s6 + $0x20] sm:$0xf] }
  0xfd   : > { %v669_v42 = vadd.f32 %v668_v31, %v662_v61  ;;  %v2904_v16 = vor.u32 %v3230_v52, %v2901_v30  ;;  %v3005_v31 = vld [vmem:[%s3610_s6 + $0x34] sm:$0xf0]  ;;  %v2917_v52 = vld [vmem:[%s3610_s6 + $0x58] sm:$0xf0]  ;;  %v3011_v30 = vld [vmem:[%s3610_s6 + $0x40] sm:$0xf] }
  0xfe   : > { %v609_v47 = vpop.f32.mrf.mxu2  ;;  %v438_v63 = vpop.f32.mrf.mxu0 }
  0xff   : > { %v638_v48 = vpop.f32.mrf.mxu3  ;;  %v610_v62 = vadd.f32 %v609_v47, %v466_v57  ;;  %v467_v0 = vpop.f32.mrf.mxu1  ;;  %v3004_v57 = vor.u32 %v3209_v44, %v3003_v43  ;;  %v3213_v43 = vld [vmem:[%s3610_s6 + $0x60] sm:$0xf0]  ;;  %v3212_v44 = vld [vmem:[%s3610_s6 + $0x5c] sm:$0xf] }
 0x100   : > { %v468_v1 = vadd.f32 %v467_v0, %v438_v63 }
 0x101   : > { %v3745_v2 = vadd.f32 %v638_v48, %v610_v62 }
 0x103   : > { %v648_v4 = vadd.f32 %v647_v59, %v3745_v2  ;;  %v663_v51 = vmul.f32 %v3745_v2, %v3745_v2  ;;  %v3008_v59 = vor.u32 %v3208_v6, %v3005_v31  ;;  %v3021_v6 = vld [vmem:[%s3610_s6 + $0x64] sm:$0xf0] }
 0x105   : > { %v670_v7 = vadd.f32 %v669_v42, %v663_v51  ;;  %v3234_v51 = vld [vmem:[%s3610_s6 + $0x50] sm:$0xf] }
 0x106   : > { %v611_v14 = vpop.f32.mrf.mxu2  ;;  %v907_v18 = vpop.f32.mrf.mxu0 }
 0x107   : > { %v640_v8 = vpop.f32.mrf.mxu3  ;;  %v612_v17 = vadd.f32 %v611_v14, %v468_v1  ;;  %v936_v19 = vpop.f32.mrf.mxu1 }
 0x108   : > { %v937_v22 = vadd.f32 %v936_v19, %v907_v18  ;;  %v3012_v18 = vor.u32 %v3211_v9, %v3011_v30  ;;  %v3016_v19 = vor.u32 %v3210_v10, %v3013_v11 }
 0x109   : > { %v3758_v23 = vadd.f32 %v640_v8, %v612_v17  ;;  %1886 = vmatmul.bf16.vlgmr.msrb.gmra.mxu0 %v2900_v15  ;;  %v2920_v8 = vor.u32 %v3234_v51, %v2917_v52 }
 0x10a   : > { %1915 = vmatmul.bf16.vlgmr.msrb.gmra.mxu1 %v2904_v16 }
 0x10b   : > { %v3761_v24 = vadd.f32 %v648_v4, %v3758_v23  ;;  %v664_v25 = vmul.f32 %v3758_v23, %v3758_v23  ;;  %2080 = vmatmul.bf16.vlgmr.msrb.gmra.mxu2 %v2996_v20  ;;  %v3235_v4 = vld [vmem:[%s3610_s6 + $0x54] sm:$0xf0] }
 0x10c   : > { %2109 = vmatmul.bf16.vlgmr.msrb.gmra.mxu3 %v3000_v21  ;;  %v2916_v14 = vor.u32 %v3235_v4, %v2915_v29 }
 0x10d   : > { %v3765_v26 = vadd.f32 %v670_v7, %v664_v25 }
 0x10e   : > { %v1080_v28 = vpop.f32.mrf.mxu2  ;;  %v909_v35 = vpop.f32.mrf.mxu0 }
 0x10f   : > { %v1109_v33 = vpop.f32.mrf.mxu3  ;;  %v1081_v34 = vadd.f32 %v1080_v28, %v937_v22  ;;  %v938_v36 = vpop.f32.mrf.mxu1 }
 0x110   : > { %v939_v37 = vadd.f32 %v938_v36, %v909_v35 }
 0x111   : > { %v3767_v38 = vadd.f32 %v1109_v33, %v1081_v34 }
 0x116   : > { %v1082_v45 = vpop.f32.mrf.mxu2  ;;  %v912_v55 = vpop.f32.mrf.mxu0 }
 0x117   : > { %v1111_v32 = vpop.f32.mrf.mxu3  ;;  %v1083_v54 = vadd.f32 %v1082_v45, %v939_v37  ;;  %v941_v56 = vpop.f32.mrf.mxu1  ;;  %v2923_v37 = vld [vmem:[%s3610_s6 + $0x64] sm:$0xf] }
 0x118   : > { %v942_v61 = vadd.f32 %v941_v56, %v912_v55 }
 0x119   : > { %v3777_v42 = vadd.f32 %v1111_v32, %v1083_v54  ;;  %1891 = vmatmul.bf16.gmra.mxu0 %v2908_v53  ;;  %v2924_v32 = vor.u32 %v3237_v39, %v2923_v37  ;;  %v2928_v53 = vor.u32 %v3236_v40, %v2925_v41 }
 0x11a   : > { %1920 = vmatmul.bf16.gmra.mxu1 %v2912_v46 }
 0x11b   : > { %2085 = vmatmul.bf16.gmra.mxu2 %v3004_v57  ;;  %v1144_v46 = vmul.f32 %v3777_v42, %v3777_v42  ;;  %v3020_v57 = vor.u32 %v3213_v43, %v3019_v50 }
 0x11c   : > { %2114 = vmatmul.bf16.gmra.mxu3 %v3008_v59  ;;  %v3024_v59 = vor.u32 %v3212_v44, %v3021_v6 }
 0x11e   : > { %v1085_v47 = vpop.f32.mrf.mxu2  ;;  %v914_v63 = vpop.f32.mrf.mxu0 }
 0x11f   : > { %v1114_v48 = vpop.f32.mrf.mxu3  ;;  %v1086_v62 = vadd.f32 %v1085_v47, %v942_v61  ;;  %v943_v0 = vpop.f32.mrf.mxu1  ;;  %v1143_v47 = vmul.f32 %v3767_v38, %v3767_v38 }
 0x120   : > { %v944_v1 = vadd.f32 %v943_v0, %v914_v63 }
 0x121   : > { %v3779_v3 = vadd.f32 %v1114_v48, %v1086_v62  ;;  %v1129_v48 = vadd.f32 %v3777_v42, %v3767_v38  ;;  %v1151_v0 = vadd.f32 %v1144_v46, %v1143_v47 }
 0x123   : > { %v1145_v62 = vmul.f32 %v3779_v3, %v3779_v3 }
 0x125   : > { %v1152_v4 = vadd.f32 %v1151_v0, %v1145_v62 }
 0x126   : > { %v1087_v12 = vpop.f32.mrf.mxu2  ;;  %v917_v16 = vpop.f32.mrf.mxu0 }
 0x127   : > { %v1116_v7 = vpop.f32.mrf.mxu3  ;;  %v1088_v15 = vadd.f32 %v1087_v12, %v944_v1  ;;  %v946_v17 = vpop.f32.mrf.mxu1  ;;  %v1130_v1 = vadd.f32 %v1129_v48, %v3779_v3 }
 0x128   : > { %v947_v20 = vadd.f32 %v946_v17, %v917_v16 }
 0x129   : > { %v3789_v21 = vadd.f32 %v1116_v7, %v1088_v15  ;;  %1896 = vmatmul.bf16.gmra.mxu0 %v2916_v14 }
 0x12a   : > { %1925 = vmatmul.bf16.gmra.mxu1 %v2920_v8 }
 0x12b   : > { %2090 = vmatmul.bf16.gmra.mxu2 %v3012_v18  ;;  %v1146_v29 = vmul.f32 %v3789_v21, %v3789_v21  ;;  %v1131_v51 = vadd.f32 %v1130_v1, %v3789_v21 }
 0x12c   : > { %2119 = vmatmul.bf16.gmra.mxu3 %v3016_v19  ;;  %v650_v19 = vrot.slane %v3761_v24, 4 }
 0x12d   : > { %v1153_v10 = vadd.f32 %v1152_v4, %v1146_v29 }
 0x12e   : > { %v1090_v22 = vpop.f32.mrf.mxu2  ;;  %v919_v33 = vpop.f32.mrf.mxu0  ;;  %v651_v37 = vadd.f32 %v650_v19, %v3761_v24 }
 0x12f   : > { %v1119_v25 = vpop.f32.mrf.mxu3  ;;  %v1091_v28 = vadd.f32 %v1090_v22, %v947_v20  ;;  %v948_v34 = vpop.f32.mrf.mxu1 }
 0x130   : > { %v949_v35 = vadd.f32 %v948_v34, %v919_v33  ;;  %v652_v6 = vrot.slane %v651_v37, 2 }
 0x131   : > { %v3791_v36 = vadd.f32 %v1119_v25, %v1091_v28  ;;  %v672_v28 = vrot.slane %v3765_v26, 4 }
 0x132   : > { %v653_v24 = vadd.f32 %v652_v6, %v651_v37 }
 0x133   : > { %v1147_v52 = vmul.f32 %v3791_v36, %v3791_v36  ;;  %v1132_v11 = vadd.f32 %v1131_v51, %v3791_v36  ;;  %v673_v43 = vadd.f32 %v672_v28, %v3765_v26 }
 0x134   : > { %v654_v29 = vrot.slane %v653_v24, 1 }
 0x135   : > { %v1154_v16 = vadd.f32 %v1153_v10, %v1147_v52 }
 0x136   : > { %v1092_v31 = vpop.f32.mrf.mxu2  ;;  %v922_v55 = vpop.f32.mrf.mxu0 }
 0x137   : > { %v1121_v45 = vpop.f32.mrf.mxu3  ;;  %v1093_v54 = vadd.f32 %v1092_v31, %v949_v35  ;;  %v951_v56 = vpop.f32.mrf.mxu1 }
 0x138   : > { %v952_v61 = vadd.f32 %v951_v56, %v922_v55 }
 0x139   : > { %v3809_v63 = vadd.f32 %v1121_v45, %v1093_v54  ;;  %1901 = vmatmul.bf16.gmra.mxu0 %v2924_v32  ;;  %v674_v32 = vrot.slane %v673_v43, 2 }
 0x13a   : > { %1930 = vmatmul.bf16.gmra.mxu1 %v2928_v53 }
 0x13b   : > { %2095 = vmatmul.bf16.gmra.mxu2 %v3020_v57  ;;  %v1148_v12 = vmul.f32 %v3809_v63, %v3809_v63  ;;  %v1133_v17 = vadd.f32 %v1132_v11, %v3809_v63  ;;  %v675_v48 = vadd.f32 %v674_v32, %v673_v43 }
 0x13c   : > { %2124 = vmatmul.bf16.gmra.mxu3 %v3024_v59 }
 0x13d   : > { %v1155_v20 = vadd.f32 %v1154_v16, %v1148_v12  ;;  %v676_v52 = vrot.slane %v675_v48, 1  ;;  %v655_v12 = vadd.f32 %v654_v29, %v653_v24 }
 0x13e   : > { %v1095_v30 = vpop.f32.mrf.mxu2  ;;  %v924_v14 = vpop.f32.mrf.mxu0 }
 0x13f   : > { %v1124_v9 = vpop.f32.mrf.mxu3  ;;  %v1096_v7 = vadd.f32 %v1095_v30, %v952_v61  ;;  %v953_v8 = vpop.f32.mrf.mxu1  ;;  %v677_v19 = vadd.f32 %v676_v52, %v675_v48 }
 0x140   : > { %v954_v15 = vadd.f32 %v953_v8, %v924_v14 }
 0x141   : > { %v3821_v18 = vadd.f32 %v1124_v9, %v1096_v7 }
 0x143   : > { %v1134_v22 = vadd.f32 %v1133_v17, %v3821_v18  ;;  %v1149_v25 = vmul.f32 %v3821_v18, %v3821_v18 }
 0x145   : > { %v1156_v33 = vadd.f32 %v1155_v20, %v1149_v25 }
 0x146   : > { %v1097_v34 = vpop.f32.mrf.mxu2  ;;  %v1393_v40 = vpop.f32.mrf.mxu0 }
 0x147   : > { %v1126_v35 = vpop.f32.mrf.mxu3  ;;  %v1098_v39 = vadd.f32 %v1097_v34, %v954_v15  ;;  %v1422_v41 = vpop.f32.mrf.mxu1 }
 0x148   : > { %v1423_v50 = vadd.f32 %v1422_v41, %v1393_v40 }
 0x149   : > { %v3830_v44 = vadd.f32 %v1126_v35, %v1098_v39 }
 0x14b   : > { %v1135_v31 = vadd.f32 %v1134_v22, %v3830_v44  ;;  %v1150_v45 = vmul.f32 %v3830_v44, %v3830_v44 }
 0x14d   : > { %v1136_v53 = vrot.slane %v1135_v31, 4  ;;  %v1157_v46 = vadd.f32 %v1156_v33, %v1150_v45 }
 0x14e   : > { %v1566_v54 = vpop.f32.mrf.mxu2  ;;  %v1395_v61 = vpop.f32.mrf.mxu0 }
 0x14f   : > { %v1595_v55 = vpop.f32.mrf.mxu3  ;;  %v1137_v56 = vadd.f32 %v1136_v53, %v1135_v31  ;;  %v1158_v57 = vrot.slane %v1157_v46, 4  ;;  %v1567_v59 = vadd.f32 %v1566_v54, %v1423_v50  ;;  %v1424_v47 = vpop.f32.mrf.mxu1 }
 0x150   : > { %v1425_v26 = vadd.f32 %v1424_v47, %v1395_v61 }
 0x151   : > { %v1138_v62 = vrot.slane %v1137_v56, 2  ;;  %v1159_v0 = vadd.f32 %v1158_v57, %v1157_v46  ;;  %v3835_v1 = vadd.f32 %v1595_v55, %v1567_v59 }
 0x153   : > { %4145 = vst [vmem:[#allocation12_spill] sm:$0xff] %v3835_v1  ;;  %v1139_v4 = vadd.f32 %v1138_v62, %v1137_v56  ;;  %v1160_v51 = vrot.slane %v1159_v0, 2 }
 0x155   : > { %v1140_v30 = vrot.slane %v1139_v4, 1  ;;  %v1161_v9 = vadd.f32 %v1160_v51, %v1159_v0 }
 0x156   : > { %v1568_v10 = vpop.f32.mrf.mxu2  ;;  %v1398_v15 = vpop.f32.mrf.mxu0 }
 0x157   : > { %v1597_v11 = vpop.f32.mrf.mxu3  ;;  %v1141_v7 = vadd.f32 %v1140_v30, %v1139_v4  ;;  %v1162_v14 = vrot.slane %v1161_v9, 1  ;;  %v1569_v8 = vadd.f32 %v1568_v10, %v1425_v26  ;;  %v1427_v16 = vpop.f32.mrf.mxu1 }
 0x158   : > { %v1428_v17 = vadd.f32 %v1427_v16, %v1398_v15 }
 0x159   : > { %v3837_v20 = vadd.f32 %v1141_v7, %v655_v12  ;;  %v1163_v22 = vadd.f32 %v1162_v14, %v1161_v9  ;;  %v3839_v25 = vadd.f32 %v1597_v11, %v1569_v8 }
 0x15b   : > { %4146 = vst [vmem:[#allocation13_spill] sm:$0xff] %v3839_v25  ;;  %v3841_v28 = vadd.f32 %v1163_v22, %v677_v19 }
 0x15e   : > { %v1571_v33 = vpop.f32.mrf.mxu2  ;;  %v1400_v37 = vpop.f32.mrf.mxu0 }
 0x15f   : > { %v1600_v34 = vpop.f32.mrf.mxu3  ;;  %v1572_v35 = vadd.f32 %v1571_v33, %v1428_v17  ;;  %v1429_v39 = vpop.f32.mrf.mxu1 }
 0x160   : > { %v1430_v40 = vadd.f32 %v1429_v39, %v1400_v37 }
 0x161   : > { %v3843_v41 = vadd.f32 %v1600_v34, %v1572_v35 }
 0x163   : > { %4147 = vst [vmem:[#allocation14_spill] sm:$0xff] %v3843_v41 }
 0x166   : > { %v1573_v50 = vpop.f32.mrf.mxu2  ;;  %v1403_v31 = vpop.f32.mrf.mxu0 }
 0x167   : > { %v1602_v43 = vpop.f32.mrf.mxu3  ;;  %v1574_v6 = vadd.f32 %v1573_v50, %v1430_v40  ;;  %v1432_v45 = vpop.f32.mrf.mxu1 }
 0x168   : > { %v1433_v32 = vadd.f32 %v1432_v45, %v1403_v31  ;;  %v1630_v45 = vmul.f32 %v3839_v25, %v3839_v25 }
 0x169   : > { %v3845_v53 = vadd.f32 %v1602_v43, %v1574_v6 }
 0x16e   : > { %v1576_v46 = vpop.f32.mrf.mxu2  ;;  %v1405_v24 = vpop.f32.mrf.mxu0 }
 0x16f   : > { %v1605_v54 = vpop.f32.mrf.mxu3  ;;  %v1577_v55 = vadd.f32 %v1576_v46, %v1433_v32  ;;  %v1434_v56 = vpop.f32.mrf.mxu1  ;;  %v1629_v32 = vmul.f32 %v3835_v1, %v3835_v1  ;;  %v1615_v46 = vadd.f32 %v3839_v25, %v3835_v1 }
 0x170   : > { %v1435_v57 = vadd.f32 %v1434_v56, %v1405_v24 }
 0x171   : > { %v3847_v59 = vadd.f32 %v1605_v54, %v1577_v55  ;;  %v1631_v54 = vmul.f32 %v3843_v41, %v3843_v41 }
 0x176   : > { %v1578_v61 = vpop.f32.mrf.mxu2  ;;  %v1408_v48 = vpop.f32.mrf.mxu0 }
 0x177   : > { %v1607_v47 = vpop.f32.mrf.mxu3  ;;  %v1579_v26 = vadd.f32 %v1578_v61, %v1435_v57  ;;  %v1437_v62 = vpop.f32.mrf.mxu1 }
 0x178   : > { %v1438_v0 = vadd.f32 %v1437_v62, %v1408_v48  ;;  %v1632_v48 = vmul.f32 %v3845_v53, %v3845_v53 }
 0x179   : > { %v3849_v29 = vadd.f32 %v1607_v47, %v1579_v26  ;;  %v1637_v47 = vadd.f32 %v1630_v45, %v1629_v32  ;;  %v1616_v26 = vadd.f32 %v1615_v46, %v3843_v41 }
 0x17b   : > { %v1634_v45 = vmul.f32 %v3849_v29, %v3849_v29 }
 0x17e   : > { %v1581_v4 = vpop.f32.mrf.mxu2  ;;  %v1410_v30 = vpop.f32.mrf.mxu0 }
 0x17f   : > { %v1610_v51 = vpop.f32.mrf.mxu3  ;;  %v1582_v52 = vadd.f32 %v1581_v4, %v1438_v0  ;;  %v1439_v9 = vpop.f32.mrf.mxu1  ;;  %v1638_v0 = vadd.f32 %v1637_v47, %v1631_v54  ;;  %v1617_v4 = vadd.f32 %v1616_v26, %v3845_v53 }
 0x180   : > { %v1440_v55 = vadd.f32 %v1439_v9, %v1410_v30 }
 0x181   : > { %v3851_v10 = vadd.f32 %v1610_v51, %v1582_v52  ;;  %v1633_v51 = vmul.f32 %v3847_v59, %v3847_v59  ;;  %v1639_v9 = vadd.f32 %v1638_v0, %v1632_v48  ;;  %v1618_v1 = vadd.f32 %v1617_v4, %v3847_v59 }
 0x183   : > { %v1640_v41 = vadd.f32 %v1639_v9, %v1633_v51  ;;  %v1635_v54 = vmul.f32 %v3851_v10, %v3851_v10 }
 0x186   : > { %v1583_v11 = vpop.f32.mrf.mxu2  ;;  %v1887_v7 = vpop.f32.mrf.mxu0 }
 0x187   : > { %v1612_v12 = vpop.f32.mrf.mxu3  ;;  %v1916_v14 = vpop.f32.mrf.mxu1  ;;  %v1584_v62 = vadd.f32 %v1583_v11, %v1440_v55  ;;  %v1619_v11 = vadd.f32 %v1618_v1, %v3849_v29 }
 0x188   : > { %v1917_v52 = vadd.f32 %v1916_v14, %v1887_v7 }
 0x189   : > { %v3870_v32 = vadd.f32 %v1612_v12, %v1584_v62 }
 0x18b   : > { %v1636_v12 = vmul.f32 %v3870_v32, %v3870_v32 }
 0x18e   : > { %v2081_v8 = vpop.f32.mrf.mxu2  ;;  %v1889_v16 = vpop.f32.mrf.mxu0 }
 0x18f   : > { %v2110_v15 = vpop.f32.mrf.mxu3  ;;  %v1918_v17 = vpop.f32.mrf.mxu1  ;;  %v2082_v55 = vadd.f32 %v2081_v8, %v1917_v52  ;;  %v3495_v52 = vmov 256.0  }
 0x190   : > { %v1919_v25 = vadd.f32 %v1918_v17, %v1889_v16  ;;  %3338 = vrcp.f32 %v3495_v52 }
 0x191   : > { %v3881_v8 = vadd.f32 %v2110_v15, %v2082_v55 }
 0x196   : > { %v2083_v19 = vpop.f32.mrf.mxu2  ;;  %v1892_v33 = vpop.f32.mrf.mxu0 }
 0x197   : > { %v2112_v22 = vpop.f32.mrf.mxu3  ;;  %v1921_v34 = vpop.f32.mrf.mxu1  ;;  %v2084_v46 = vadd.f32 %v2083_v19, %v1919_v25 }
 0x198   : > { %v1922_v30 = vadd.f32 %v1921_v34, %v1892_v33  ;;  %v1641_v33 = vadd.f32 %v1640_v41, %v1634_v45  ;;  %v1620_v34 = vadd.f32 %v1619_v11, %v3851_v10 }
 0x199   : > { %v3878_v19 = vadd.f32 %v2112_v22, %v2084_v46 }
 0x19a   : > { %v1642_v48 = vadd.f32 %v1641_v33, %v1635_v54  ;;  %v1621_v62 = vadd.f32 %v1620_v34, %v3870_v32  ;;  %v3339_v33 = vpop.eup %3338 }
 0x19b   : > { %v2130_v15 = vadd.f32 %v3878_v19, %v3881_v8  ;;  %vm2179_vm0 = vweird.f32 %v3339_v33 }
 0x19c   : > { %v1622_v22 = vrot.slane %v1621_v62, 4 }
 0x19e   : > { %v2086_v35 = vpop.f32.mrf.mxu2  ;;  %v1894_v39 = vpop.f32.mrf.mxu0  ;;  %v1623_v11 = vadd.f32 %v1622_v22, %v1621_v62 }
 0x19f   : > { %v2115_v37 = vpop.f32.mrf.mxu3  ;;  %v1923_v40 = vpop.f32.mrf.mxu1  ;;  %v2087_v14 = vadd.f32 %v2086_v35, %v1922_v30 }
 0x1a0   : > { %v1924_v16 = vadd.f32 %v1923_v40, %v1894_v39  ;;  %v1643_v40 = vadd.f32 %v1642_v48, %v1636_v12 }
 0x1a1   : > { %v3883_v0 = vadd.f32 %v2115_v37, %v2087_v14 }
 0x1a3   : > { %v2131_v9 = vadd.f32 %v2130_v15, %v3883_v0 }
 0x1a6   : > { %v2088_v50 = vpop.f32.mrf.mxu2  ;;  %v1897_v6 = vpop.f32.mrf.mxu0 }
 0x1a7   : > { %v2117_v43 = vpop.f32.mrf.mxu3  ;;  %v1926_v31 = vpop.f32.mrf.mxu1  ;;  %v2089_v1 = vadd.f32 %v2088_v50, %v1924_v16  ;;  %v2144_v50 = vmul.f32 %v3881_v8, %v3881_v8 }
 0x1a8   : > { %v1927_v17 = vadd.f32 %v1926_v31, %v1897_v6  ;;  %v2145_v6 = vmul.f32 %v3878_v19, %v3878_v19 }
 0x1a9   : > { %v3887_v31 = vadd.f32 %v2117_v43, %v2089_v1  ;;  %v1644_v43 = vrot.slane %v1643_v40, 4 }
 0x1aa   : > { %v2152_v30 = vadd.f32 %v2145_v6, %v2144_v50  ;;  %v2175_v6 = vmul.f32 256.0, %v3339_v33 }
 0x1ab   : > { %v2147_v45 = vmul.f32 %v3887_v31, %v3887_v31  ;;  %v2132_v14 = vadd.f32 %v2131_v9, %v3887_v31 }
 0x1ae   : > { %v2091_v24 = vpop.f32.mrf.mxu2  ;;  %v1899_v57 = vpop.f32.mrf.mxu0 }
 0x1af   : > { %v2120_v56 = vpop.f32.mrf.mxu3  ;;  %v1928_v61 = vpop.f32.mrf.mxu1  ;;  %v2092_v35 = vadd.f32 %v2091_v24, %v1927_v17  ;;  %v2146_v24 = vmul.f32 %v3883_v0, %v3883_v0  ;;  %v1645_v17 = vadd.f32 %v1644_v43, %v1643_v40 }
 0x1b0   : > { %v1929_v39 = vadd.f32 %v1928_v61, %v1899_v57 }
 0x1b1   : > { %v3895_v57 = vadd.f32 %v2120_v56, %v2092_v35  ;;  %v1646_v40 = vrot.slane %v1645_v17, 2 }
 0x1b3   : > { %v2148_v56 = vmul.f32 %v3895_v57, %v3895_v57  ;;  %v2133_v12 = vadd.f32 %v2132_v14, %v3895_v57  ;;  %v1647_v52 = vadd.f32 %v1646_v40, %v1645_v17 }
 0x1b6   : > { %v2093_v47 = vpop.f32.mrf.mxu2  ;;  %v1902_v26 = vpop.f32.mrf.mxu0 }
 0x1b7   : > { %v2122_v7 = vpop.f32.mrf.mxu3  ;;  %v1931_v25 = vpop.f32.mrf.mxu1  ;;  %v2094_v4 = vadd.f32 %v2093_v47, %v1929_v39  ;;  %v2153_v47 = vadd.f32 %v2152_v30, %v2146_v24 }
 0x1b8   : > { %v1932_v41 = vadd.f32 %v1931_v25, %v1902_v26  ;;  %v1624_v25 = vrot.slane %v1623_v11, 2 }
 0x1b9   : > { %v3900_v46 = vadd.f32 %v2122_v7, %v2094_v4  ;;  %v2154_v34 = vadd.f32 %v2153_v47, %v2147_v45  ;;  %v1648_v47 = vrot.slane %v1647_v52, 1 }
 0x1ba   : > { %v1625_v15 = vadd.f32 %v1624_v25, %v1623_v11 }
 0x1bb   : > { %v2149_v7 = vmul.f32 %v3900_v46, %v3900_v46  ;;  %v2155_v48 = vadd.f32 %v2154_v34, %v2148_v56  ;;  %v2134_v62 = vadd.f32 %v2133_v12, %v3900_v46 }
 0x1bc   : > { %v1626_v9 = vrot.slane %v1625_v15, 1 }
 0x1bd   : > { %v2156_v4 = vadd.f32 %v2155_v48, %v2149_v7 }
 0x1be   : > { %v2096_v51 = vpop.f32.mrf.mxu2  ;;  %v1904_v54 = vpop.f32.mrf.mxu0  ;;  %v1627_v34 = vadd.f32 %v1626_v9, %v1625_v15 }
 0x1bf   : > { %v2125_v37 = vpop.f32.mrf.mxu3  ;;  %v2097_v61 = vadd.f32 %v2096_v51, %v1932_v41  ;;  %v1933_v55 = vpop.f32.mrf.mxu1 }
 0x1c0   : > { %v1934_v26 = vadd.f32 %v1933_v55, %v1904_v54  ;;  %v1628_v48 = vadd.f32 %v1627_v34, %v3837_v20 }
 0x1c1   : > { %v3905_v16 = vadd.f32 %v2125_v37, %v2097_v61  ;;  %v2176_v61 = vsub.f32 1.0, %v2175_v6 }
 0x1c3   : > { %v2150_v35 = vmul.f32 %v3905_v16, %v3905_v16  ;;  %v2135_v22 = vadd.f32 %v2134_v62, %v3905_v16  ;;  %v2177_v55 = vmul.f32 %v3339_v33, %v2176_v61 }
 0x1c5   : > { %v2157_v51 = vadd.f32 %v2156_v4, %v2150_v35  ;;  %v2178_v7 = vadd.f32 %v3339_v33, %v2177_v55 }
 0x1c6   : > { %v2098_v1 = vpop.f32.mrf.mxu2 }
 0x1c7   : > { %v2099_v39 = vadd.f32 %v2098_v1, %v1934_v26  ;;  %v2127_v41 = vpop.f32.mrf.mxu3  ;;  %v1649_v26 = vadd.f32 %v1648_v47, %v1647_v52  ;;  %v2180_v35 = vsel %vm2179_vm0, %v3339_v33, %v2178_v7 }
 0x1c9   : > { %v3914_v50 = vadd.f32 %v2127_v41, %v2099_v39  ;;  %v1650_v39 = vadd.f32 %v1649_v26, %v3841_v28 }
 0x1cb   : > { %v2136_v37 = vadd.f32 %v2135_v22, %v3914_v50  ;;  %v2151_v24 = vmul.f32 %v3914_v50, %v3914_v50 }
 0x1cd   : > { %v2137_v43 = vrot.slane %v2136_v37, 4  ;;  %v2158_v30 = vadd.f32 %v2157_v51, %v2151_v24 }
 0x1cf   : > { %v2138_v45 = vadd.f32 %v2137_v43, %v2136_v37  ;;  %v2159_v54 = vrot.slane %v2158_v30, 4 }
 0x1d1   : > { %v2139_v14 = vrot.slane %v2138_v45, 2  ;;  %v2160_v56 = vadd.f32 %v2159_v54, %v2158_v30 }
 0x1d3   : > { %v2140_v12 = vadd.f32 %v2139_v14, %v2138_v45  ;;  %v2161_v11 = vrot.slane %v2160_v56, 2 }
 0x1d5   : > { %v2141_v25 = vrot.slane %v2140_v12, 1  ;;  %v2162_v1 = vadd.f32 %v2161_v11, %v2160_v56 }
 0x1d7   : > { %v2142_v17 = vadd.f32 %v2141_v25, %v2140_v12  ;;  %v2163_v62 = vrot.slane %v2162_v1, 1 }
 0x1d9   : > { %v2143_v41 = vadd.f32 %v2142_v17, %v1628_v48  ;;  %v2164_v6 = vadd.f32 %v2163_v62, %v2162_v1 }
 0x1db   : > { %v2165_v40 = vadd.f32 %v2164_v6, %v1650_v39  ;;  %v3921_v4 = vmul.f32 %v2180_v35, %v2143_v41 }
 0x1dd   : > { %v2182_v22 = vmul.f32 %v2180_v35, %v2165_v40  ;;  %v2183_v15 = vmul.f32 %v3921_v4, %v3921_v4  ;;  %v2205_v51 = vsub.f32 %v3700_v5, %v3921_v4  ;;  %v2206_v20 = vsub.f32 %v3702_v60, %v3921_v4 }
 0x1de   : > { %v2207_v33 = vsub.f32 %v3714_v13, %v3921_v4  ;;  %v2208_v28 = vsub.f32 %v3719_v27, %v3921_v4  ;;  %v2209_v37 = vsub.f32 %v3729_v49, %v3921_v4  ;;  %v2210_v61 = vsub.f32 %v3738_v58, %v3921_v4 }
 0x1df   : > { %v2184_v24 = vsub.f32 %v2182_v22, %v2183_v15  ;;  %v2211_v52 = vsub.f32 %v3745_v2, %v3921_v4  ;;  %v2212_v5 = vsub.f32 %v3758_v23, %v3921_v4  ;;  %v2258_v13 = vsub.f32 %v3809_v63, %v3921_v4 }
 0x1e0   : > { %v2259_v27 = vsub.f32 %v3821_v18, %v3921_v4  ;;  %v2260_v49 = vsub.f32 %v3830_v44, %v3921_v4  ;;  %v2353_v58 = vsub.f32 %v3887_v31, %v3921_v4  ;;  %v2354_v2 = vsub.f32 %v3895_v57, %v3921_v4 }
 0x1e1   : > { %v2185_v60 = vmax.f32 %v2184_v24, 0.0  ;;  %v2355_v23 = vsub.f32 %v3900_v46, %v3921_v4  ;;  %v2356_v30 = vsub.f32 %v3905_v16, %v3921_v4  ;;  %v2357_v14 = vsub.f32 %v3914_v50, %v3921_v4  ;;  %v4148_v50 = vld [vmem:[#allocation12_spill] sm:$0xff] }
 0x1e2   : > { %v2253_v34 = vsub.f32 %v3767_v38, %v3921_v4  ;;  %v2254_v12 = vsub.f32 %v3777_v42, %v3921_v4  ;;  %v2255_v11 = vsub.f32 %v3779_v3, %v3921_v4  ;;  %v2256_v7 = vsub.f32 %v3789_v21, %v3921_v4  ;;  %v4149_v38 = vld [vmem:[#allocation13_spill] sm:$0xff]  ;;  %v4150_v42 = vld [vmem:[#allocation14_spill] sm:$0xff] }
 0x1e3   : > { %v2186_v43 = vadd.f32 1e-05, %v2185_v60  ;;  %v2257_v26 = vsub.f32 %v3791_v36, %v3921_v4  ;;  %v2301_v25 = vsub.f32 %v4148_v50, %v3921_v4  ;;  %v2302_v48 = vsub.f32 %v4149_v38, %v3921_v4 }
 0x1e4   : > { %v2303_v17 = vsub.f32 %v4150_v42, %v3921_v4  ;;  %v2304_v3 = vsub.f32 %v3845_v53, %v3921_v4  ;;  %v2307_v63 = vsub.f32 %v3851_v10, %v3921_v4  ;;  %v2308_v18 = vsub.f32 %v3870_v32, %v3921_v4 }
 0x1e5   : > { %3340 = vrsqrt.f32 %v2186_v43  ;;  %vm2193_vm2 = vweird.f32 %v2186_v43  ;;  %v2350_v42 = vsub.f32 %v3881_v8, %v3921_v4  ;;  %v2351_v53 = vsub.f32 %v3878_v19, %v3921_v4 }
 0x1eb   : > { %v3341_v9 = vpop.eup %3340 }
 0x1ec   : > { %v2188_v45 = vmul.f32 %v3341_v9, %v2186_v43  ;;  %vm2194_vm1 = vweird.f32 %v3341_v9 }
 0x1ed   : > { %vm2195_vm3 = vmor %vm2193_vm2, %vm2194_vm1 }
 0x1ee   : > { %v2189_v54 = vmul.f32 %v3341_v9, %v2188_v45 }
 0x1f0   : > { %v2190_v55 = vmul.f32 0.5, %v2189_v54 }
 0x1f2   : > { %v2191_v47 = vsub.f32 1.5, %v2190_v55 }
 0x1f4   : > { %v2192_v56 = vmul.f32 %v3341_v9, %v2191_v47 }
 0x1f6   : > { %v3969_v1 = vsel %vm2195_vm3, %v3341_v9, %v2192_v56 }
 0x1f7   : > { %v2365_v21 = vmul.f32 %v2357_v14, %v3969_v1  ;;  %v2213_v62 = vmul.f32 %v2205_v51, %v3969_v1  ;;  %v2214_v36 = vmul.f32 %v2206_v20, %v3969_v1  ;;  %v2215_v35 = vmul.f32 %v2207_v33, %v3969_v1 }
 0x1f8   : > { %v2216_v39 = vmul.f32 %v2208_v28, %v3969_v1  ;;  %v2217_v41 = vmul.f32 %v2209_v37, %v3969_v1  ;;  %v2218_v6 = vmul.f32 %v2210_v61, %v3969_v1  ;;  %v2219_v40 = vmul.f32 %v2211_v52, %v3969_v1 }
 0x1f9   : > { %v2373_v22 = vmax.f32 %v2365_v21, 0.0  ;;  %v2220_v15 = vmul.f32 %v2212_v5, %v3969_v1  ;;  %v2221_v24 = vmax.f32 %v2213_v62, 0.0  ;;  %v2222_v60 = vmax.f32 %v2214_v36, 0.0 }
 0x1fa   : > { %v2223_v43 = vmax.f32 %v2215_v35, 0.0  ;;  %v2224_v9 = vmax.f32 %v2216_v39, 0.0  ;;  %v2225_v51 = vmax.f32 %v2217_v41, 0.0  ;;  %v2226_v45 = vmax.f32 %v2218_v6, 0.0 }
 0x1fb   : > { %v2381_v20 = vpack.c.bf16 %v2373_v22, %v2373_v22  ;;  %v2305_v33 = vsub.f32 %v3847_v59, %v3921_v4  ;;  %v2306_v28 = vsub.f32 %v3849_v29, %v3921_v4  ;;  %v2229_v37 = vpack.c.bf16 %v2221_v24, %v2221_v24 }
 0x1fc   : > { %v2227_v61 = vmax.f32 %v2219_v40, 0.0  ;;  %v2228_v54 = vmax.f32 %v2220_v15, 0.0  ;;  %v2230_v52 = vpack.c.bf16 %v2222_v60, %v2222_v60  ;;  %v2231_v55 = vpack.c.bf16 %v2223_v43, %v2223_v43 }
 0x1fd   : > { %3104 = vst [vmem:[%s3991_s19 + $0x7c] sm:$0xf] %v2381_v20  ;;  %v2232_v5 = vpack.c.bf16 %v2224_v9, %v2224_v9  ;;  %v2233_v47 = vpack.c.bf16 %v2225_v51, %v2225_v51  ;;  %v2234_v14 = vpack.c.bf16 %v2226_v45, %v2226_v45  ;;  %v2261_v59 = vmul.f32 %v2253_v34, %v3969_v1 }
 0x1fe   : > { %2237 = vst [vmem:[%s3991_s19] sm:$0xf] %v2229_v37  ;;  %v2262_v29 = vmul.f32 %v2254_v12, %v3969_v1  ;;  %v2263_v56 = vmul.f32 %v2255_v11, %v3969_v1  ;;  %v2264_v21 = vmul.f32 %v2256_v7, %v3969_v1  ;;  %v2265_v62 = vmul.f32 %v2257_v26, %v3969_v1 }
 0x1ff   : > { %2238 = vst [vmem:[%s3991_s19 + $0x8] sm:$0xf] %v2230_v52  ;;  %v2266_v36 = vmul.f32 %v2258_v13, %v3969_v1  ;;  %v2267_v34 = vmul.f32 %v2259_v27, %v3969_v1  ;;  %v2268_v12 = vmul.f32 %v2260_v49, %v3969_v1  ;;  %v2269_v11 = vmax.f32 %v2261_v59, 0.0 }
 0x200   : > { %v2235_v7 = vpack.c.bf16 %v2227_v61, %v2227_v61  ;;  %2239 = vst [vmem:[%s3991_s19 + $0x10] sm:$0xf] %v2231_v55  ;;  %v2270_v26 = vmax.f32 %v2262_v29, 0.0  ;;  %v2271_v35 = vmax.f32 %v2263_v56, 0.0  ;;  %v2272_v39 = vmax.f32 %v2264_v21, 0.0 }
 0x201   : > { %v2236_v13 = vpack.c.bf16 %v2228_v54, %v2228_v54  ;;  %2240 = vst [vmem:[%s3991_s19 + $0x18] sm:$0xf] %v2232_v5  ;;  %v2273_v27 = vmax.f32 %v2265_v62, 0.0  ;;  %v2274_v44 = vmax.f32 %v2266_v36, 0.0  ;;  %v2275_v49 = vmax.f32 %v2267_v34, 0.0 }
 0x202   : > { %2241 = vst [vmem:[%s3991_s19 + $0x20] sm:$0xf] %v2233_v47  ;;  %v2276_v41 = vmax.f32 %v2268_v12, 0.0  ;;  %v2277_v6 = vpack.c.bf16 %v2269_v11, %v2269_v11  ;;  %v2278_v40 = vpack.c.bf16 %v2270_v26, %v2270_v26  ;;  %v2279_v22 = vpack.c.bf16 %v2271_v35, %v2271_v35 }
 0x203   : > { %2242 = vst [vmem:[%s3991_s19 + $0x28] sm:$0xf] %v2234_v14  ;;  %v2280_v15 = vpack.c.bf16 %v2272_v39, %v2272_v39  ;;  %v2309_v10 = vmul.f32 %v2301_v25, %v3969_v1  ;;  %v2310_v32 = vmul.f32 %v2302_v48, %v3969_v1  ;;  %v2311_v24 = vmul.f32 %v2303_v17, %v3969_v1 }
 0x204   : > { %2243 = vst [vmem:[%s3991_s19 + $0x30] sm:$0xf] %v2235_v7  ;;  %v2312_v60 = vmul.f32 %v2304_v3, %v3969_v1  ;;  %v2313_v50 = vmul.f32 %v2305_v33, %v3969_v1  ;;  %v2314_v25 = vmul.f32 %v2306_v28, %v3969_v1  ;;  %v2315_v38 = vmul.f32 %v2307_v63, %v3969_v1 }
 0x205   : > { %2244 = vst [vmem:[%s3991_s19 + $0x38] sm:$0xf] %v2236_v13  ;;  %v2316_v48 = vmul.f32 %v2308_v18, %v3969_v1  ;;  %v2317_v43 = vmax.f32 %v2309_v10, 0.0  ;;  %v2281_v9 = vpack.c.bf16 %v2273_v27, %v2273_v27  ;;  %v2282_v17 = vpack.c.bf16 %v2274_v44, %v2274_v44 }
 0x206   : > { %2285 = vst [vmem:[%s3991_s19 + $0x4] sm:$0xf] %v2277_v6  ;;  %v2318_v3 = vmax.f32 %v2310_v32, 0.0  ;;  %v2352_v51 = vsub.f32 %v3883_v0, %v3921_v4  ;;  %v2283_v45 = vpack.c.bf16 %v2275_v49, %v2275_v49  ;;  %v2284_v20 = vpack.c.bf16 %v2276_v41, %v2276_v41 }
 0x207   : > { %2286 = vst [vmem:[%s3991_s19 + $0xc] sm:$0xf] %v2278_v40  ;;  %v2319_v33 = vmax.f32 %v2311_v24, 0.0  ;;  %v2320_v28 = vmax.f32 %v2312_v60, 0.0  ;;  %v2321_v37 = vmax.f32 %v2313_v50, 0.0  ;;  %v2325_v8 = vpack.c.bf16 %v2317_v43, %v2317_v43 }
 0x208   : > { %2287 = vst [vmem:[%s3991_s19 + $0x14] sm:$0xf] %v2279_v22  ;;  %v2358_v61 = vmul.f32 %v2350_v42, %v3969_v1  ;;  %v2359_v19 = vmul.f32 %v2351_v53, %v3969_v1  ;;  %v2360_v54 = vmul.f32 %v2352_v51, %v3969_v1  ;;  %v2361_v0 = vmul.f32 %v2353_v58, %v3969_v1 }
 0x209   : > { %2288 = vst [vmem:[%s3991_s19 + $0x1c] sm:$0xf] %v2280_v15  ;;  %v2362_v52 = vmul.f32 %v2354_v2, %v3969_v1  ;;  %v2322_v55 = vmax.f32 %v2314_v25, 0.0  ;;  %v2326_v5 = vpack.c.bf16 %v2318_v3, %v2318_v3  ;;  %v2363_v47 = vmul.f32 %v2355_v23, %v3969_v1 }
 0x20a   : > { %2289 = vst [vmem:[%s3991_s19 + $0x24] sm:$0xf] %v2281_v9  ;;  %v2364_v31 = vmul.f32 %v2356_v30, %v3969_v1  ;;  %v2323_v58 = vmax.f32 %v2315_v38, 0.0  ;;  %v2327_v57 = vpack.c.bf16 %v2319_v33, %v2319_v33  ;;  %v2324_v2 = vmax.f32 %v2316_v48, 0.0 }
 0x20b   : > { %2290 = vst [vmem:[%s3991_s19 + $0x2c] sm:$0xf] %v2282_v17  ;;  %v2328_v14 = vpack.c.bf16 %v2320_v28, %v2320_v28  ;;  %v2329_v59 = vpack.c.bf16 %v2321_v37, %v2321_v37  ;;  %v2366_v46 = vmax.f32 %v2358_v61, 0.0  ;;  %v2330_v29 = vpack.c.bf16 %v2322_v55, %v2322_v55 }
 0x20c   : > { %2291 = vst [vmem:[%s3991_s19 + $0x34] sm:$0xf] %v2283_v45  ;;  %v2367_v23 = vmax.f32 %v2359_v19, 0.0  ;;  %v2331_v56 = vpack.c.bf16 %v2323_v58, %v2323_v58  ;;  %v2368_v16 = vmax.f32 %v2360_v54, 0.0  ;;  %v2332_v4 = vpack.c.bf16 %v2324_v2, %v2324_v2 }
 0x20d   : > { %2292 = vst [vmem:[%s3991_s19 + $0x3c] sm:$0xf] %v2284_v20  ;;  %v2369_v30 = vmax.f32 %v2361_v0, 0.0  ;;  %v2370_v1 = vmax.f32 %v2362_v52, 0.0  ;;  %v2374_v21 = vpack.c.bf16 %v2366_v46, %v2366_v46  ;;  %v2371_v62 = vmax.f32 %v2363_v47, 0.0 }
 0x20e   : > { %3089 = vst [vmem:[%s3991_s19 + $0x40] sm:$0xf] %v2325_v8  ;;  %v2375_v36 = vpack.c.bf16 %v2367_v23, %v2367_v23  ;;  %v2372_v34 = vmax.f32 %v2364_v31, 0.0  ;;  %v2376_v12 = vpack.c.bf16 %v2368_v16, %v2368_v16 }
 0x20f   : > { %3090 = vst [vmem:[%s3991_s19 + $0x48] sm:$0xf] %v2326_v5  ;;  %v2377_v11 = vpack.c.bf16 %v2369_v30, %v2369_v30  ;;  %v2378_v7 = vpack.c.bf16 %v2370_v1, %v2370_v1  ;;  %v2379_v26 = vpack.c.bf16 %v2371_v62, %v2371_v62 }
 0x210   : > { %3091 = vst [vmem:[%s3991_s19 + $0x50] sm:$0xf] %v2327_v57  ;;  %v2380_v35 = vpack.c.bf16 %v2372_v34, %v2372_v34 }
 0x211   : > { %3092 = vst [vmem:[%s3991_s19 + $0x58] sm:$0xf] %v2328_v14 }
 0x212   : > { %3093 = vst [vmem:[%s3991_s19 + $0x60] sm:$0xf] %v2329_v59 }
 0x213   : > { %3094 = vst [vmem:[%s3991_s19 + $0x68] sm:$0xf] %v2330_v29 }
 0x214   : > { %3095 = vst [vmem:[%s3991_s19 + $0x70] sm:$0xf] %v2331_v56 }
 0x215   : > { %3096 = vst [vmem:[%s3991_s19 + $0x78] sm:$0xf] %v2332_v4 }
 0x216   : > { %3097 = vst [vmem:[%s3991_s19 + $0x44] sm:$0xf] %v2374_v21 }
 0x217   : > { %3098 = vst [vmem:[%s3991_s19 + $0x4c] sm:$0xf] %v2375_v36 }
 0x218   : > { %3099 = vst [vmem:[%s3991_s19 + $0x54] sm:$0xf] %v2376_v12 }
 0x219   : > { %3100 = vst [vmem:[%s3991_s19 + $0x5c] sm:$0xf] %v2377_v11 }
 0x21a   : > { %3101 = vst [vmem:[%s3991_s19 + $0x64] sm:$0xf] %v2378_v7 }
 0x21b   : > { %3102 = vst [vmem:[%s3991_s19 + $0x6c] sm:$0xf] %v2379_v26 }
 0x21c   : > { %3103 = vst [vmem:[%s3991_s19 + $0x74] sm:$0xf] %v2380_v35 }
 0x21d   : > { %3429 = shalt.err (!%p3426_p0)
}
 0x21e   : > { %s3496_s28 = smov 128   ;;  %s3497_s4 = smov 8  }
 0x21f   : > { %3264 = dma.vmem_to_hbm [thread:$0]  (%p3588_p5), %s2406_s12, 2048, %s2408_s16, %s2391_s21, %s3496_s28, %s3496_s28, %s3497_s4  }
 0x220 PF: > { %s2422_s6 = sand.u32 1, %s3468_s9   ;;  %p3275_p3 = pnand %p2508_p11, %p3562_p6 }
 0x221   : > { %s2423_s17 = scalar_lea.sflag [#allocation5], %s2422_s6 }
 0x222   : > { %p3276_p7 = pneg %p3275_p3 }
 0x224   : > { %3463 = dma.done.wait (%p3276_p7), %s2423_s17, 2048  }
 0x225   : > { %3465 = vsyncadd (%p3276_p7), %s2423_s17, 4294965248  ;;  %s19_s14 = sadd.s32 1, %s3488_s14   ;;  %s4151_s9 = smov %s3472_s10 }
 0x226   : > { %p16_p9 = scmp.ge.s32.totalorder %s19_s14, 4   ;;  %s4152_s10 = smov %s3476_s11 }
 0x227   : > { %s4153_s11 = smov %s3597_s7  ;;  %s4154_s12 = smov %s3484_s13 }
 0x228   : > { %s4155_s13 = smov %s4157_s29  ;;  %18 = sbr.rel (!%p16_p9) target bundleno = 7 (0x7), region = 87 }
 0x22d   :  { %2429 = vsyncpa [#allocation4], 1 }
 0x22e   :  { %2431 = vsyncpa [#allocation4 + $0x1], 1 }
 0x22f   :  { %2432 = vsyncpa [#allocation7], 1 }
 0x230   :  { %2433 = vsyncpa [#allocation5], 1 }
 0x231   :  { %2435 = vsyncpa [#allocation5 + $0x1], 1 }

</bundles_post_ra>
